<compile_context>
chip_gen: v6e
topology: v6e:2x2x1
jax: 0.10.0
libtpu: 0.0.40
codegen_flags: <defaults>
</compile_context>

<pallas_src>
import math
import jax
import jax.numpy as jnp
from jax.experimental import pallas as pl
from jax.experimental.pallas import tpu as pltpu

D_MODEL = 32
N_HEADS = 4
D_K = D_MODEL // N_HEADS
D_FF = 64
EPS = 1e-6  # LayerNormalization eps (added to std, matching the torch module)


# ----------------------------- kernel helpers ------------------------------ #

def _layernorm(x, alpha, bias):
    # x: (S, D); alpha/bias: (1, D)
    # torch.std(dim=-1) is UNBIASED (ddof=1); eps is added to std, not var.
    mean = jnp.mean(x, axis=-1, keepdims=True)
    diff = x - mean
    var = jnp.sum(diff * diff, axis=-1, keepdims=True) * (1.0 / (x.shape[-1] - 1))
    inv = pl.reciprocal(jnp.sqrt(var) + EPS, approx=True)   # EUP slot, frees VALU
    return alpha * (diff * inv) + bias


def _mha(xq, xkv, wq_h, wk_h, wv_h, wo_h, mask):
    # xq: (Sq, D), xkv: (Sk, D)
    # wq_h / wk_h / wv_h: (H, D, Dk)   (1/sqrt(Dk) already folded into wq_h)
    # wo_h: (H, Dk, D),  mask: (Sq, Sk)  (0 == masked)
    h = wq_h.shape[0]
    xq_b = jnp.broadcast_to(xq[None], (h,) + xq.shape)            # (H, Sq, D)
    xkv_b = xq_b if xkv is xq else jnp.broadcast_to(xkv[None], (h,) + xkv.shape)

    # Head-batched projections: leading batch dim -> canonical batched matmuls.
    q = jnp.einsum('hsd,hdk->hsk', xq_b, wq_h, preferred_element_type=jnp.float32)
    k = jnp.einsum('hsd,hdk->hsk', xkv_b, wk_h, preferred_element_type=jnp.float32)
    v = jnp.einsum('hsd,hdk->hsk', xkv_b, wv_h, preferred_element_type=jnp.float32)

    # Scores for all heads at once; additive mask bias computed once, broadcast over H.
    s = jnp.einsum('hqd,hkd->hqk', q, k, preferred_element_type=jnp.float32)
    bias = jnp.where(mask == 0.0, -1e9, 0.0)                      # (Sq, Sk), once
    s = s + bias[None]

    m = jnp.max(s, axis=-1, keepdims=True)
    e = jnp.exp(s - m)
    p = e * pl.reciprocal(jnp.sum(e, axis=-1, keepdims=True), approx=True)

    o = jnp.einsum('hqk,hkd->hqd', p, v, preferred_element_type=jnp.float32)  # (H, Sq, Dk)
    # concat-heads @ w_o  ==  sum_h ( o_h @ wo_h ); the sum over the leading head
    # axis is just 4 VALU adds of separate vregs (no cross-lane traffic).
    out = jnp.einsum('hqd,hdo->hqo', o, wo_h, preferred_element_type=jnp.float32)
    return jnp.sum(out, axis=0)                                   # (Sq, D)


# --------------------------------- kernel ---------------------------------- #

def decoder_block_kernel(
    x_ref, enc_ref, src_mask_ref, tgt_mask_ref,
    wq1_ref, wk1_ref, wv1_ref, wo1_ref,          # self-attention (head-split)
    wq2_ref, wk2_ref, wv2_ref, wo2_ref,          # cross-attention (head-split)
    w1_ref, b1_ref, w2_ref, b2_ref,              # feed-forward
    ln1a_ref, ln1b_ref, ln2a_ref, ln2b_ref, ln3a_ref, ln3b_ref,  # layernorms
    out_ref,
):
    x = x_ref[0]                 # (Sq, D)
    enc = enc_ref[0]             # (Sk, D)
    src_mask = src_mask_ref[0]   # (Sq, Sk)
    tgt_mask = tgt_mask_ref[0]   # (Sq, Sq)

    # Residual 1: x + SelfAttn(LN(x))   (dropout == identity)
    xn = _layernorm(x, ln1a_ref[...], ln1b_ref[...])
    x = x + _mha(xn, xn, wq1_ref[...], wk1_ref[...], wv1_ref[...], wo1_ref[...], tgt_mask)

    # Residual 2: x + CrossAttn(LN(x), enc)
    xn = _layernorm(x, ln2a_ref[...], ln2b_ref[...])
    x = x + _mha(xn, enc, wq2_ref[...], wk2_ref[...], wv2_ref[...], wo2_ref[...], src_mask)

    # Residual 3: x + FFN(LN(x))
    xn = _layernorm(x, ln3a_ref[...], ln3b_ref[...])
    hmid = jnp.maximum(
        jnp.dot(xn, w1_ref[...], preferred_element_type=jnp.float32) + b1_ref[...], 0.0)
    x = x + jnp.dot(hmid, w2_ref[...], preferred_element_type=jnp.float32) + b2_ref[...]

    # D=32 < 128 lanes -> partially-masked stores; lane-dense repack intentionally
    # skipped at these tiny sizes (would require an in-kernel relayout for ~nothing).
    out_ref[0] = x


# --------------------------------- wrapper --------------------------------- #

def _split_qkv(w, scale=1.0):
    # torch-style (in, out = H*Dk) -> (H, in, Dk); optional score scale folded in.
    return jnp.transpose((w * scale).reshape(D_MODEL, N_HEADS, D_K), (1, 0, 2))


def _split_out(w):
    # (in = H*Dk, out) -> (H, Dk, out)
    return w.reshape(N_HEADS, D_K, D_MODEL)


def decoder_block(x, enc, src_mask, tgt_mask, params):
    (wq1, wk1, wv1, wo1, wq2, wk2, wv2, wo2,
     w1, b1, w2, b2, ln1a, ln1b, ln2a, ln2b, ln3a, ln3b) = params

    scale = 1.0 / math.sqrt(D_K)   # folded into w_q once, at trace time (free)
    kparams = (
        _split_qkv(wq1, scale), _split_qkv(wk1), _split_qkv(wv1), _split_out(wo1),
        _split_qkv(wq2, scale), _split_qkv(wk2), _split_qkv(wv2), _split_out(wo2),
        w1, b1, w2, b2, ln1a, ln1b, ln2a, ln2b, ln3a, ln3b,
    )

    B, Sq, D = x.shape
    Sk = enc.shape[1]

    def full_spec(shape):
        nd = len(shape)
        # constant block index -> weight stays resident in VMEM across grid steps
        return pl.BlockSpec(shape, lambda b, _nd=nd: (0,) * _nd)

    in_specs = [
        pl.BlockSpec((1, Sq, D), lambda b: (b, 0, 0)),    # x
        pl.BlockSpec((1, Sk, D), lambda b: (b, 0, 0)),    # encoder output
        pl.BlockSpec((1, Sq, Sk), lambda b: (b, 0, 0)),   # src_mask
        pl.BlockSpec((1, Sq, Sq), lambda b: (b, 0, 0)),   # tgt_mask
    ] + [full_spec(p.shape) for p in kparams]

    return pl.pallas_call(
        decoder_block_kernel,
        out_shape=jax.ShapeDtypeStruct((B, Sq, D), jnp.float32),
        grid=(B,),
        in_specs=in_specs,
        out_specs=pl.BlockSpec((1, Sq, D), lambda b: (b, 0, 0)),
        compiler_params=pltpu.CompilerParams(
            # B blocks are fully independent -> parallel (megacore-shards on v7x).
            dimension_semantics=("parallel",)),
    )(x, enc, src_mask, tgt_mask, *kparams)


# ------------------------- pure-JAX reference check ------------------------ #

def reference(x, enc, src_mask, tgt_mask, params):
    (wq1, wk1, wv1, wo1, wq2, wk2, wv2, wo2,
     w1, b1, w2, b2, ln1a, ln1b, ln2a, ln2b, ln3a, ln3b) = params

    def ln(x, a, b):
        m = x.mean(-1, keepdims=True)
        s = jnp.sqrt(((x - m) ** 2).sum(-1, keepdims=True) / (x.shape[-1] - 1))
        return a * (x - m) / (s + EPS) + b

    def mha(xq, xkv, wq, wk, wv, wo, mask):
        B, Sq, D = xq.shape
        Sk = xkv.shape[1]
        q = (xq @ wq).reshape(B, Sq, N_HEADS, D_K).transpose(0, 2, 1, 3)
        k = (xkv @ wk).reshape(B, Sk, N_HEADS, D_K).transpose(0, 2, 1, 3)
        v = (xkv @ wv).reshape(B, Sk, N_HEADS, D_K).transpose(0, 2, 1, 3)
        s = (q @ k.transpose(0, 1, 3, 2)) / math.sqrt(D_K)
        s = jnp.where(mask[:, None, :, :] == 0, -1e9, s)
        p = jax.nn.softmax(s, axis=-1)
        o = (p @ v).transpose(0, 2, 1, 3).reshape(B, Sq, D)
        return o @ wo

    xn = ln(x, ln1a, ln1b)
    x = x + mha(xn, xn, wq1, wk1, wv1, wo1, tgt_mask)
    xn = ln(x, ln2a, ln2b)
    x = x + mha(xn, enc, wq2, wk2, wv2, wo2, src_mask)
    xn = ln(x, ln3a, ln3b)
    x = x + (jnp.maximum(xn @ w1 + b1, 0.0) @ w2 + b2)
    return x


# ----------------------------------- main ----------------------------------- #

if __name__ == "__main__":
    B, Sq, Sk = 2, 8, 8
    key = jax.random.PRNGKey(0)
    ks = jax.random.split(key, 16)

    def rnd(k, shape, scale=0.1):
        return (scale * jax.random.normal(k, shape)).astype(jnp.float32)

    # activations
    x = rnd(ks[0], (B, Sq, D_MODEL), 1.0)
    enc = rnd(ks[1], (B, Sk, D_MODEL), 1.0)

    # masks: causal tgt mask, all-ones src mask (float, 0 == masked)
    tgt_mask = jnp.broadcast_to(
        jnp.tril(jnp.ones((Sq, Sq), jnp.float32)), (B, Sq, Sq))
    src_mask = jnp.ones((B, Sq, Sk), jnp.float32)

    # parameters (deterministic): attention weights (in, out), ffn, layernorms
    wq1, wk1, wv1, wo1 = (rnd(ks[i], (D_MODEL, D_MODEL)) for i in range(2, 6))
    wq2, wk2, wv2, wo2 = (rnd(ks[i], (D_MODEL, D_MODEL)) for i in range(6, 10))
    w1 = rnd(ks[10], (D_MODEL, D_FF))
    b1 = rnd(ks[11], (1, D_FF))
    w2 = rnd(ks[12], (D_FF, D_MODEL))
    b2 = rnd(ks[13], (1, D_MODEL))
    ln1a = jnp.ones((1, D_MODEL), jnp.float32); ln1b = jnp.zeros((1, D_MODEL), jnp.float32)
    ln2a = jnp.ones((1, D_MODEL), jnp.float32); ln2b = jnp.zeros((1, D_MODEL), jnp.float32)
    ln3a = jnp.ones((1, D_MODEL), jnp.float32); ln3b = jnp.zeros((1, D_MODEL), jnp.float32)

    params = (wq1, wk1, wv1, wo1, wq2, wk2, wv2, wo2,
              w1, b1, w2, b2, ln1a, ln1b, ln2a, ln2b, ln3a, ln3b)

    out = decoder_block(x, enc, src_mask, tgt_mask, params)
    out = jax.block_until_ready(out)

    ref = jax.block_until_ready(reference(x, enc, src_mask, tgt_mask, params))
    assert out.shape == (B, Sq, D_MODEL)
    assert jnp.allclose(out, ref, atol=2e-3, rtol=2e-3), \
        f"max abs diff {jnp.max(jnp.abs(out - ref))}"

    print("KERNEL_OK")
</pallas_src>

<mosaic_0001>
module attributes {stable_mosaic.version = 11 : i64} {
  func.func @decoder_block_kernel(%arg0: i32, %arg1: memref<1x8x32xf32, #tpu.memory_space<vmem>>, %arg2: memref<1x8x32xf32, #tpu.memory_space<vmem>>, %arg3: memref<1x8x8xf32, #tpu.memory_space<vmem>>, %arg4: memref<1x8x8xf32, #tpu.memory_space<vmem>>, %arg5: memref<4x32x8xf32, #tpu.memory_space<vmem>>, %arg6: memref<4x32x8xf32, #tpu.memory_space<vmem>>, %arg7: memref<4x32x8xf32, #tpu.memory_space<vmem>>, %arg8: memref<4x8x32xf32, #tpu.memory_space<vmem>>, %arg9: memref<4x32x8xf32, #tpu.memory_space<vmem>>, %arg10: memref<4x32x8xf32, #tpu.memory_space<vmem>>, %arg11: memref<4x32x8xf32, #tpu.memory_space<vmem>>, %arg12: memref<4x8x32xf32, #tpu.memory_space<vmem>>, %arg13: memref<32x64xf32, #tpu.memory_space<vmem>>, %arg14: memref<1x64xf32, #tpu.memory_space<vmem>>, %arg15: memref<64x32xf32, #tpu.memory_space<vmem>>, %arg16: memref<1x32xf32, #tpu.memory_space<vmem>>, %arg17: memref<1x32xf32, #tpu.memory_space<vmem>>, %arg18: memref<1x32xf32, #tpu.memory_space<vmem>>, %arg19: memref<1x32xf32, #tpu.memory_space<vmem>>, %arg20: memref<1x32xf32, #tpu.memory_space<vmem>>, %arg21: memref<1x32xf32, #tpu.memory_space<vmem>>, %arg22: memref<1x32xf32, #tpu.memory_space<vmem>>, %arg23: memref<1x8x32xf32, #tpu.memory_space<vmem>>) attributes {dimension_semantics = [#tpu.dimension_semantics<parallel>], iteration_bounds = array<i64: 2>, scalar_prefetch = 0 : i64, scratch_operands = 0 : i64, tpu.core_type = #tpu.core_type<tc>, window_params = [{transform_indices = @transform_0, window_bounds = array<i64: 1, 8, 32>}, {transform_indices = @transform_1, window_bounds = array<i64: 1, 8, 32>}, {transform_indices = @transform_2, window_bounds = array<i64: 1, 8, 8>}, {transform_indices = @transform_3, window_bounds = array<i64: 1, 8, 8>}, {pipeline_mode = #tpu.pipeline_mode<synchronous>, transform_indices = @transform_4, window_bounds = array<i64: 4, 32, 8>}, {pipeline_mode = #tpu.pipeline_mode<synchronous>, transform_indices = @transform_5, window_bounds = array<i64: 4, 32, 8>}, {pipeline_mode = #tpu.pipeline_mode<synchronous>, transform_indices = @transform_6, window_bounds = array<i64: 4, 32, 8>}, {pipeline_mode = #tpu.pipeline_mode<synchronous>, transform_indices = @transform_7, window_bounds = array<i64: 4, 8, 32>}, {pipeline_mode = #tpu.pipeline_mode<synchronous>, transform_indices = @transform_8, window_bounds = array<i64: 4, 32, 8>}, {pipeline_mode = #tpu.pipeline_mode<synchronous>, transform_indices = @transform_9, window_bounds = array<i64: 4, 32, 8>}, {pipeline_mode = #tpu.pipeline_mode<synchronous>, transform_indices = @transform_10, window_bounds = array<i64: 4, 32, 8>}, {pipeline_mode = #tpu.pipeline_mode<synchronous>, transform_indices = @transform_11, window_bounds = array<i64: 4, 8, 32>}, {pipeline_mode = #tpu.pipeline_mode<synchronous>, transform_indices = @transform_12, window_bounds = array<i64: 32, 64>}, {pipeline_mode = #tpu.pipeline_mode<synchronous>, transform_indices = @transform_13, window_bounds = array<i64: 1, 64>}, {pipeline_mode = #tpu.pipeline_mode<synchronous>, transform_indices = @transform_14, window_bounds = array<i64: 64, 32>}, {pipeline_mode = #tpu.pipeline_mode<synchronous>, transform_indices = @transform_15, window_bounds = array<i64: 1, 32>}, {pipeline_mode = #tpu.pipeline_mode<synchronous>, transform_indices = @transform_16, window_bounds = array<i64: 1, 32>}, {pipeline_mode = #tpu.pipeline_mode<synchronous>, transform_indices = @transform_17, window_bounds = array<i64: 1, 32>}, {pipeline_mode = #tpu.pipeline_mode<synchronous>, transform_indices = @transform_18, window_bounds = array<i64: 1, 32>}, {pipeline_mode = #tpu.pipeline_mode<synchronous>, transform_indices = @transform_19, window_bounds = array<i64: 1, 32>}, {pipeline_mode = #tpu.pipeline_mode<synchronous>, transform_indices = @transform_20, window_bounds = array<i64: 1, 32>}, {pipeline_mode = #tpu.pipeline_mode<synchronous>, transform_indices = @transform_21, window_bounds = array<i64: 1, 32>}, {transform_indices = @transform_22, window_bounds = array<i64: 1, 8, 32>}]} {
    %c0 = arith.constant 0 : index
    %c0_0 = arith.constant 0 : index
    %c0_1 = arith.constant 0 : index
    %0 = vector.load %arg1[%c0, %c0_0, %c0_1] : memref<1x8x32xf32, #tpu.memory_space<vmem>>, vector<1x8x32xf32>
    %1 = vector.shape_cast %0 : vector<1x8x32xf32> to vector<8x32xf32>
    %c0_2 = arith.constant 0 : index
    %c0_3 = arith.constant 0 : index
    %c0_4 = arith.constant 0 : index
    %2 = vector.load %arg2[%c0_2, %c0_3, %c0_4] : memref<1x8x32xf32, #tpu.memory_space<vmem>>, vector<1x8x32xf32>
    %3 = vector.shape_cast %2 : vector<1x8x32xf32> to vector<8x32xf32>
    %c0_5 = arith.constant 0 : index
    %c0_6 = arith.constant 0 : index
    %c0_7 = arith.constant 0 : index
    %4 = vector.load %arg3[%c0_5, %c0_6, %c0_7] : memref<1x8x8xf32, #tpu.memory_space<vmem>>, vector<1x8x8xf32>
    %5 = vector.shape_cast %4 : vector<1x8x8xf32> to vector<8x8xf32>
    %c0_8 = arith.constant 0 : index
    %c0_9 = arith.constant 0 : index
    %c0_10 = arith.constant 0 : index
    %6 = vector.load %arg4[%c0_8, %c0_9, %c0_10] : memref<1x8x8xf32, #tpu.memory_space<vmem>>, vector<1x8x8xf32>
    %7 = vector.shape_cast %6 : vector<1x8x8xf32> to vector<8x8xf32>
    %c0_11 = arith.constant 0 : index
    %c0_12 = arith.constant 0 : index
    %8 = vector.load %arg17[%c0_11, %c0_12] : memref<1x32xf32, #tpu.memory_space<vmem>>, vector<1x32xf32>
    %c0_13 = arith.constant 0 : index
    %c0_14 = arith.constant 0 : index
    %9 = vector.load %arg18[%c0_13, %c0_14] : memref<1x32xf32, #tpu.memory_space<vmem>>, vector<1x32xf32>
    %cst = arith.constant dense<0.000000e+00> : vector<8xf32>
    %10 = vector.multi_reduction <add>, %1, %cst [1] : vector<8x32xf32> to vector<8xf32>
    %11 = vector.shape_cast %10 : vector<8xf32> to vector<8x1xf32>
    %cst_15 = arith.constant 3.200000e+01 : f32
    %12 = vector.broadcast %cst_15 : f32 to vector<8x1xf32>
    %13 = arith.divf %11, %12 : vector<8x1xf32>
    %14 = vector.broadcast %13 : vector<8x1xf32> to vector<8x32xf32>
    %15 = arith.subf %1, %14 : vector<8x32xf32>
    %16 = arith.mulf %15, %15 : vector<8x32xf32>
    %cst_16 = arith.constant dense<0.000000e+00> : vector<8xf32>
    %17 = vector.multi_reduction <add>, %16, %cst_16 [1] : vector<8x32xf32> to vector<8xf32>
    %18 = vector.shape_cast %17 : vector<8xf32> to vector<8x1xf32>
    %cst_17 = arith.constant 0.0322580636 : f32
    %19 = vector.broadcast %cst_17 : f32 to vector<8x1xf32>
    %20 = arith.mulf %18, %19 : vector<8x1xf32>
    %21 = math.sqrt %20 : vector<8x1xf32>
    %cst_18 = arith.constant 9.99999997E-7 : f32
    %22 = vector.broadcast %cst_18 : f32 to vector<8x1xf32>
    %23 = arith.addf %21, %22 : vector<8x1xf32>
    %24 = tpu.reciprocal %23 {approx = true} : vector<8x1xf32> -> vector<8x1xf32>
    %25 = vector.broadcast %24 : vector<8x1xf32> to vector<8x32xf32>
    %26 = arith.mulf %15, %25 : vector<8x32xf32>
    %27 = vector.broadcast %8 : vector<1x32xf32> to vector<8x32xf32>
    %28 = arith.mulf %27, %26 : vector<8x32xf32>
    %29 = vector.broadcast %9 : vector<1x32xf32> to vector<8x32xf32>
    %30 = arith.addf %28, %29 : vector<8x32xf32>
    %c0_19 = arith.constant 0 : index
    %c0_20 = arith.constant 0 : index
    %c0_21 = arith.constant 0 : index
    %31 = vector.load %arg5[%c0_19, %c0_20, %c0_21] : memref<4x32x8xf32, #tpu.memory_space<vmem>>, vector<4x32x8xf32>
    %c0_22 = arith.constant 0 : index
    %c0_23 = arith.constant 0 : index
    %c0_24 = arith.constant 0 : index
    %32 = vector.load %arg6[%c0_22, %c0_23, %c0_24] : memref<4x32x8xf32, #tpu.memory_space<vmem>>, vector<4x32x8xf32>
    %c0_25 = arith.constant 0 : index
    %c0_26 = arith.constant 0 : index
    %c0_27 = arith.constant 0 : index
    %33 = vector.load %arg7[%c0_25, %c0_26, %c0_27] : memref<4x32x8xf32, #tpu.memory_space<vmem>>, vector<4x32x8xf32>
    %c0_28 = arith.constant 0 : index
    %c0_29 = arith.constant 0 : index
    %c0_30 = arith.constant 0 : index
    %34 = vector.load %arg8[%c0_28, %c0_29, %c0_30] : memref<4x8x32xf32, #tpu.memory_space<vmem>>, vector<4x8x32xf32>
    %35 = vector.shape_cast %30 : vector<8x32xf32> to vector<1x8x32xf32>
    %36 = vector.shape_cast %35 : vector<1x8x32xf32> to vector<1x8x32xf32>
    %37 = vector.broadcast %36 : vector<1x8x32xf32> to vector<4x8x32xf32>
    "tpu.trace_start"() <{level = 10 : i32, message = "hsd,hdk->hsk"}> : () -> ()
    %cst_31 = arith.constant dense<0.000000e+00> : vector<4x8x8xf32>
    %38 = tpu.matmul %37, %31, %cst_31 {dimension_numbers = #tpu.dot_dimension_numbers<[2], [1], [1], [2], [0, 0, 0, 1, 1, 2], [0], [0]>} : vector<4x8x32xf32>, vector<4x32x8xf32>, vector<4x8x8xf32> -> vector<4x8x8xf32>
    %cst_32 = arith.constant dense<0.000000e+00> : vector<4x8x8xf32>
    %39 = tpu.matmul %37, %32, %cst_32 {dimension_numbers = #tpu.dot_dimension_numbers<[2], [1], [1], [2], [0, 0, 0, 1, 1, 2], [0], [0]>} : vector<4x8x32xf32>, vector<4x32x8xf32>, vector<4x8x8xf32> -> vector<4x8x8xf32>
    %cst_33 = arith.constant dense<0.000000e+00> : vector<4x8x8xf32>
    %40 = tpu.matmul %37, %33, %cst_33 {dimension_numbers = #tpu.dot_dimension_numbers<[2], [1], [1], [2], [0, 0, 0, 1, 1, 2], [0], [0]>} : vector<4x8x32xf32>, vector<4x32x8xf32>, vector<4x8x8xf32> -> vector<4x8x8xf32>
    "tpu.trace_stop"() : () -> ()
    "tpu.trace_start"() <{level = 10 : i32, message = "hqd,hkd->hqk"}> : () -> ()
    %cst_34 = arith.constant dense<0.000000e+00> : vector<4x8x8xf32>
    %41 = tpu.matmul %38, %39, %cst_34 {dimension_numbers = #tpu.dot_dimension_numbers<[2], [2], [1], [1], [0, 0, 0, 1, 1, 1], [0], [0]>} : vector<4x8x8xf32>, vector<4x8x8xf32>, vector<4x8x8xf32> -> vector<4x8x8xf32>
    %cst_35 = arith.constant 0.000000e+00 : f32
    "tpu.trace_stop"() : () -> ()
    %42 = vector.broadcast %cst_35 : f32 to vector<8x8xf32>
    %43 = arith.cmpf oeq, %7, %42 : vector<8x8xf32>
    %cst_36 = arith.constant -1.000000e+09 : f32
    %cst_37 = arith.constant 0.000000e+00 : f32
    %44 = vector.broadcast %cst_36 : f32 to vector<8x8xf32>
    %45 = vector.broadcast %cst_37 : f32 to vector<8x8xf32>
    %46 = arith.select %43, %44, %45 : vector<8x8xi1>, vector<8x8xf32>
    %47 = vector.shape_cast %46 : vector<8x8xf32> to vector<1x8x8xf32>
    %48 = vector.broadcast %47 : vector<1x8x8xf32> to vector<4x8x8xf32>
    %49 = arith.addf %41, %48 : vector<4x8x8xf32>
    %cst_38 = arith.constant dense<0xFF800000> : vector<4x8xf32>
    %50 = vector.multi_reduction <maximumf>, %49, %cst_38 [2] : vector<4x8x8xf32> to vector<4x8xf32>
    %51 = vector.shape_cast %50 : vector<4x8xf32> to vector<4x8x1xf32>
    %52 = vector.broadcast %51 : vector<4x8x1xf32> to vector<4x8x8xf32>
    %53 = arith.subf %49, %52 : vector<4x8x8xf32>
    %54 = math.exp %53 : vector<4x8x8xf32>
    %cst_39 = arith.constant dense<0.000000e+00> : vector<4x8xf32>
    %55 = vector.multi_reduction <add>, %54, %cst_39 [2] : vector<4x8x8xf32> to vector<4x8xf32>
    %56 = vector.shape_cast %55 : vector<4x8xf32> to vector<4x8x1xf32>
    %57 = tpu.reciprocal %56 {approx = true} : vector<4x8x1xf32> -> vector<4x8x1xf32>
    %58 = vector.broadcast %57 : vector<4x8x1xf32> to vector<4x8x8xf32>
    %59 = arith.mulf %54, %58 : vector<4x8x8xf32>
    "tpu.trace_start"() <{level = 10 : i32, message = "hqk,hkd->hqd"}> : () -> ()
    %cst_40 = arith.constant dense<0.000000e+00> : vector<4x8x8xf32>
    %60 = tpu.matmul %59, %40, %cst_40 {dimension_numbers = #tpu.dot_dimension_numbers<[2], [1], [1], [2], [0, 0, 0, 1, 1, 2], [0], [0]>} : vector<4x8x8xf32>, vector<4x8x8xf32>, vector<4x8x8xf32> -> vector<4x8x8xf32>
    "tpu.trace_stop"() : () -> ()
    "tpu.trace_start"() <{level = 10 : i32, message = "hqd,hdo->hqo"}> : () -> ()
    %cst_41 = arith.constant dense<0.000000e+00> : vector<4x8x32xf32>
    %61 = tpu.matmul %60, %34, %cst_41 {dimension_numbers = #tpu.dot_dimension_numbers<[2], [1], [1], [2], [0, 0, 0, 1, 1, 2], [0], [0]>} : vector<4x8x8xf32>, vector<4x8x32xf32>, vector<4x8x32xf32> -> vector<4x8x32xf32>
    "tpu.trace_stop"() : () -> ()
    %cst_42 = arith.constant dense<0.000000e+00> : vector<8x32xf32>
    %62 = vector.multi_reduction <add>, %61, %cst_42 [0] : vector<4x8x32xf32> to vector<8x32xf32>
    %63 = arith.addf %1, %62 : vector<8x32xf32>
    %c0_43 = arith.constant 0 : index
    %c0_44 = arith.constant 0 : index
    %64 = vector.load %arg19[%c0_43, %c0_44] : memref<1x32xf32, #tpu.memory_space<vmem>>, vector<1x32xf32>
    %c0_45 = arith.constant 0 : index
    %c0_46 = arith.constant 0 : index
    %65 = vector.load %arg20[%c0_45, %c0_46] : memref<1x32xf32, #tpu.memory_space<vmem>>, vector<1x32xf32>
    %cst_47 = arith.constant dense<0.000000e+00> : vector<8xf32>
    %66 = vector.multi_reduction <add>, %63, %cst_47 [1] : vector<8x32xf32> to vector<8xf32>
    %67 = vector.shape_cast %66 : vector<8xf32> to vector<8x1xf32>
    %cst_48 = arith.constant 3.200000e+01 : f32
    %68 = vector.broadcast %cst_48 : f32 to vector<8x1xf32>
    %69 = arith.divf %67, %68 : vector<8x1xf32>
    %70 = vector.broadcast %69 : vector<8x1xf32> to vector<8x32xf32>
    %71 = arith.subf %63, %70 : vector<8x32xf32>
    %72 = arith.mulf %71, %71 : vector<8x32xf32>
    %cst_49 = arith.constant dense<0.000000e+00> : vector<8xf32>
    %73 = vector.multi_reduction <add>, %72, %cst_49 [1] : vector<8x32xf32> to vector<8xf32>
    %74 = vector.shape_cast %73 : vector<8xf32> to vector<8x1xf32>
    %cst_50 = arith.constant 0.0322580636 : f32
    %75 = vector.broadcast %cst_50 : f32 to vector<8x1xf32>
    %76 = arith.mulf %74, %75 : vector<8x1xf32>
    %77 = math.sqrt %76 : vector<8x1xf32>
    %cst_51 = arith.constant 9.99999997E-7 : f32
    %78 = vector.broadcast %cst_51 : f32 to vector<8x1xf32>
    %79 = arith.addf %77, %78 : vector<8x1xf32>
    %80 = tpu.reciprocal %79 {approx = true} : vector<8x1xf32> -> vector<8x1xf32>
    %81 = vector.broadcast %80 : vector<8x1xf32> to vector<8x32xf32>
    %82 = arith.mulf %71, %81 : vector<8x32xf32>
    %83 = vector.broadcast %64 : vector<1x32xf32> to vector<8x32xf32>
    %84 = arith.mulf %83, %82 : vector<8x32xf32>
    %85 = vector.broadcast %65 : vector<1x32xf32> to vector<8x32xf32>
    %86 = arith.addf %84, %85 : vector<8x32xf32>
    %c0_52 = arith.constant 0 : index
    %c0_53 = arith.constant 0 : index
    %c0_54 = arith.constant 0 : index
    %87 = vector.load %arg9[%c0_52, %c0_53, %c0_54] : memref<4x32x8xf32, #tpu.memory_space<vmem>>, vector<4x32x8xf32>
    %c0_55 = arith.constant 0 : index
    %c0_56 = arith.constant 0 : index
    %c0_57 = arith.constant 0 : index
    %88 = vector.load %arg10[%c0_55, %c0_56, %c0_57] : memref<4x32x8xf32, #tpu.memory_space<vmem>>, vector<4x32x8xf32>
    %c0_58 = arith.constant 0 : index
    %c0_59 = arith.constant 0 : index
    %c0_60 = arith.constant 0 : index
    %89 = vector.load %arg11[%c0_58, %c0_59, %c0_60] : memref<4x32x8xf32, #tpu.memory_space<vmem>>, vector<4x32x8xf32>
    %c0_61 = arith.constant 0 : index
    %c0_62 = arith.constant 0 : index
    %c0_63 = arith.constant 0 : index
    %90 = vector.load %arg12[%c0_61, %c0_62, %c0_63] : memref<4x8x32xf32, #tpu.memory_space<vmem>>, vector<4x8x32xf32>
    %91 = vector.shape_cast %86 : vector<8x32xf32> to vector<1x8x32xf32>
    %92 = vector.shape_cast %91 : vector<1x8x32xf32> to vector<1x8x32xf32>
    %93 = vector.broadcast %92 : vector<1x8x32xf32> to vector<4x8x32xf32>
    %94 = vector.shape_cast %3 : vector<8x32xf32> to vector<1x8x32xf32>
    %95 = vector.shape_cast %94 : vector<1x8x32xf32> to vector<1x8x32xf32>
    %96 = vector.broadcast %95 : vector<1x8x32xf32> to vector<4x8x32xf32>
    "tpu.trace_start"() <{level = 10 : i32, message = "hsd,hdk->hsk"}> : () -> ()
    %cst_64 = arith.constant dense<0.000000e+00> : vector<4x8x8xf32>
    %97 = tpu.matmul %93, %87, %cst_64 {dimension_numbers = #tpu.dot_dimension_numbers<[2], [1], [1], [2], [0, 0, 0, 1, 1, 2], [0], [0]>} : vector<4x8x32xf32>, vector<4x32x8xf32>, vector<4x8x8xf32> -> vector<4x8x8xf32>
    %cst_65 = arith.constant dense<0.000000e+00> : vector<4x8x8xf32>
    %98 = tpu.matmul %96, %88, %cst_65 {dimension_numbers = #tpu.dot_dimension_numbers<[2], [1], [1], [2], [0, 0, 0, 1, 1, 2], [0], [0]>} : vector<4x8x32xf32>, vector<4x32x8xf32>, vector<4x8x8xf32> -> vector<4x8x8xf32>
    %cst_66 = arith.constant dense<0.000000e+00> : vector<4x8x8xf32>
    %99 = tpu.matmul %96, %89, %cst_66 {dimension_numbers = #tpu.dot_dimension_numbers<[2], [1], [1], [2], [0, 0, 0, 1, 1, 2], [0], [0]>} : vector<4x8x32xf32>, vector<4x32x8xf32>, vector<4x8x8xf32> -> vector<4x8x8xf32>
    "tpu.trace_stop"() : () -> ()
    "tpu.trace_start"() <{level = 10 : i32, message = "hqd,hkd->hqk"}> : () -> ()
    %cst_67 = arith.constant dense<0.000000e+00> : vector<4x8x8xf32>
    %100 = tpu.matmul %97, %98, %cst_67 {dimension_numbers = #tpu.dot_dimension_numbers<[2], [2], [1], [1], [0, 0, 0, 1, 1, 1], [0], [0]>} : vector<4x8x8xf32>, vector<4x8x8xf32>, vector<4x8x8xf32> -> vector<4x8x8xf32>
    %cst_68 = arith.constant 0.000000e+00 : f32
    "tpu.trace_stop"() : () -> ()
    %101 = vector.broadcast %cst_68 : f32 to vector<8x8xf32>
    %102 = arith.cmpf oeq, %5, %101 : vector<8x8xf32>
    %cst_69 = arith.constant -1.000000e+09 : f32
    %cst_70 = arith.constant 0.000000e+00 : f32
    %103 = vector.broadcast %cst_69 : f32 to vector<8x8xf32>
    %104 = vector.broadcast %cst_70 : f32 to vector<8x8xf32>
    %105 = arith.select %102, %103, %104 : vector<8x8xi1>, vector<8x8xf32>
    %106 = vector.shape_cast %105 : vector<8x8xf32> to vector<1x8x8xf32>
    %107 = vector.broadcast %106 : vector<1x8x8xf32> to vector<4x8x8xf32>
    %108 = arith.addf %100, %107 : vector<4x8x8xf32>
    %cst_71 = arith.constant dense<0xFF800000> : vector<4x8xf32>
    %109 = vector.multi_reduction <maximumf>, %108, %cst_71 [2] : vector<4x8x8xf32> to vector<4x8xf32>
    %110 = vector.shape_cast %109 : vector<4x8xf32> to vector<4x8x1xf32>
    %111 = vector.broadcast %110 : vector<4x8x1xf32> to vector<4x8x8xf32>
    %112 = arith.subf %108, %111 : vector<4x8x8xf32>
    %113 = math.exp %112 : vector<4x8x8xf32>
    %cst_72 = arith.constant dense<0.000000e+00> : vector<4x8xf32>
    %114 = vector.multi_reduction <add>, %113, %cst_72 [2] : vector<4x8x8xf32> to vector<4x8xf32>
    %115 = vector.shape_cast %114 : vector<4x8xf32> to vector<4x8x1xf32>
    %116 = tpu.reciprocal %115 {approx = true} : vector<4x8x1xf32> -> vector<4x8x1xf32>
    %117 = vector.broadcast %116 : vector<4x8x1xf32> to vector<4x8x8xf32>
    %118 = arith.mulf %113, %117 : vector<4x8x8xf32>
    "tpu.trace_start"() <{level = 10 : i32, message = "hqk,hkd->hqd"}> : () -> ()
    %cst_73 = arith.constant dense<0.000000e+00> : vector<4x8x8xf32>
    %119 = tpu.matmul %118, %99, %cst_73 {dimension_numbers = #tpu.dot_dimension_numbers<[2], [1], [1], [2], [0, 0, 0, 1, 1, 2], [0], [0]>} : vector<4x8x8xf32>, vector<4x8x8xf32>, vector<4x8x8xf32> -> vector<4x8x8xf32>
    "tpu.trace_stop"() : () -> ()
    "tpu.trace_start"() <{level = 10 : i32, message = "hqd,hdo->hqo"}> : () -> ()
    %cst_74 = arith.constant dense<0.000000e+00> : vector<4x8x32xf32>
    %120 = tpu.matmul %119, %90, %cst_74 {dimension_numbers = #tpu.dot_dimension_numbers<[2], [1], [1], [2], [0, 0, 0, 1, 1, 2], [0], [0]>} : vector<4x8x8xf32>, vector<4x8x32xf32>, vector<4x8x32xf32> -> vector<4x8x32xf32>
    "tpu.trace_stop"() : () -> ()
    %cst_75 = arith.constant dense<0.000000e+00> : vector<8x32xf32>
    %121 = vector.multi_reduction <add>, %120, %cst_75 [0] : vector<4x8x32xf32> to vector<8x32xf32>
    %122 = arith.addf %63, %121 : vector<8x32xf32>
    %c0_76 = arith.constant 0 : index
    %c0_77 = arith.constant 0 : index
    %123 = vector.load %arg21[%c0_76, %c0_77] : memref<1x32xf32, #tpu.memory_space<vmem>>, vector<1x32xf32>
    %c0_78 = arith.constant 0 : index
    %c0_79 = arith.constant 0 : index
    %124 = vector.load %arg22[%c0_78, %c0_79] : memref<1x32xf32, #tpu.memory_space<vmem>>, vector<1x32xf32>
    %cst_80 = arith.constant dense<0.000000e+00> : vector<8xf32>
    %125 = vector.multi_reduction <add>, %122, %cst_80 [1] : vector<8x32xf32> to vector<8xf32>
    %126 = vector.shape_cast %125 : vector<8xf32> to vector<8x1xf32>
    %cst_81 = arith.constant 3.200000e+01 : f32
    %127 = vector.broadcast %cst_81 : f32 to vector<8x1xf32>
    %128 = arith.divf %126, %127 : vector<8x1xf32>
    %129 = vector.broadcast %128 : vector<8x1xf32> to vector<8x32xf32>
    %130 = arith.subf %122, %129 : vector<8x32xf32>
    %131 = arith.mulf %130, %130 : vector<8x32xf32>
    %cst_82 = arith.constant dense<0.000000e+00> : vector<8xf32>
    %132 = vector.multi_reduction <add>, %131, %cst_82 [1] : vector<8x32xf32> to vector<8xf32>
    %133 = vector.shape_cast %132 : vector<8xf32> to vector<8x1xf32>
    %cst_83 = arith.constant 0.0322580636 : f32
    %134 = vector.broadcast %cst_83 : f32 to vector<8x1xf32>
    %135 = arith.mulf %133, %134 : vector<8x1xf32>
    %136 = math.sqrt %135 : vector<8x1xf32>
    %cst_84 = arith.constant 9.99999997E-7 : f32
    %137 = vector.broadcast %cst_84 : f32 to vector<8x1xf32>
    %138 = arith.addf %136, %137 : vector<8x1xf32>
    %139 = tpu.reciprocal %138 {approx = true} : vector<8x1xf32> -> vector<8x1xf32>
    %140 = vector.broadcast %139 : vector<8x1xf32> to vector<8x32xf32>
    %141 = arith.mulf %130, %140 : vector<8x32xf32>
    %142 = vector.broadcast %123 : vector<1x32xf32> to vector<8x32xf32>
    %143 = arith.mulf %142, %141 : vector<8x32xf32>
    %144 = vector.broadcast %124 : vector<1x32xf32> to vector<8x32xf32>
    %145 = arith.addf %143, %144 : vector<8x32xf32>
    %c0_85 = arith.constant 0 : index
    %c0_86 = arith.constant 0 : index
    %146 = vector.load %arg13[%c0_85, %c0_86] : memref<32x64xf32, #tpu.memory_space<vmem>>, vector<32x64xf32>
    %cst_87 = arith.constant dense<0.000000e+00> : vector<8x64xf32>
    %147 = tpu.matmul %145, %146, %cst_87 {dimension_numbers = #tpu.dot_dimension_numbers<[1], [0], [0], [1], [0, 0, 1, 1], [], []>} : vector<8x32xf32>, vector<32x64xf32>, vector<8x64xf32> -> vector<8x64xf32>
    %c0_88 = arith.constant 0 : index
    %c0_89 = arith.constant 0 : index
    %148 = vector.load %arg14[%c0_88, %c0_89] : memref<1x64xf32, #tpu.memory_space<vmem>>, vector<1x64xf32>
    %149 = vector.broadcast %148 : vector<1x64xf32> to vector<8x64xf32>
    %150 = arith.addf %147, %149 : vector<8x64xf32>
    %cst_90 = arith.constant 0.000000e+00 : f32
    %151 = vector.broadcast %cst_90 : f32 to vector<8x64xf32>
    %152 = arith.maximumf %150, %151 : vector<8x64xf32>
    %c0_91 = arith.constant 0 : index
    %c0_92 = arith.constant 0 : index
    %153 = vector.load %arg15[%c0_91, %c0_92] : memref<64x32xf32, #tpu.memory_space<vmem>>, vector<64x32xf32>
    %cst_93 = arith.constant dense<0.000000e+00> : vector<8x32xf32>
    %154 = tpu.matmul %152, %153, %cst_93 {dimension_numbers = #tpu.dot_dimension_numbers<[1], [0], [0], [1], [0, 0, 1, 1], [], []>} : vector<8x64xf32>, vector<64x32xf32>, vector<8x32xf32> -> vector<8x32xf32>
    %155 = arith.addf %122, %154 : vector<8x32xf32>
    %c0_94 = arith.constant 0 : index
    %c0_95 = arith.constant 0 : index
    %156 = vector.load %arg16[%c0_94, %c0_95] : memref<1x32xf32, #tpu.memory_space<vmem>>, vector<1x32xf32>
    %157 = vector.broadcast %156 : vector<1x32xf32> to vector<8x32xf32>
    %158 = arith.addf %155, %157 : vector<8x32xf32>
    %c0_96 = arith.constant 0 : index
    %c0_97 = arith.constant 0 : index
    %c0_98 = arith.constant 0 : index
    %159 = vector.load %arg23[%c0_96, %c0_97, %c0_98] : memref<1x8x32xf32, #tpu.memory_space<vmem>>, vector<1x8x32xf32>
    %160 = vector.shape_cast %159 : vector<1x8x32xf32> to vector<8x32xf32>
    %161 = vector.shape_cast %158 : vector<8x32xf32> to vector<1x8x32xf32>
    tpu.vector_store %arg23[%c0_96, %c0_97, %c0_98], %161 {strides = array<i32>} : memref<1x8x32xf32, #tpu.memory_space<vmem>>, vector<1x8x32xf32>,
    return
  }
  func.func @transform_0(%arg0: i32) -> (i32, i32, i32) {
    %c0_i32 = arith.constant 0 : i32
    %c0_i32_0 = arith.constant 0 : i32
    %c0_i32_1 = arith.constant 0 : i32
    return %arg0, %c0_i32, %c0_i32_0 : i32, i32, i32
  }
  func.func @transform_1(%arg0: i32) -> (i32, i32, i32) {
    %c0_i32 = arith.constant 0 : i32
    %c0_i32_0 = arith.constant 0 : i32
    %c0_i32_1 = arith.constant 0 : i32
    return %arg0, %c0_i32, %c0_i32_0 : i32, i32, i32
  }
  func.func @transform_2(%arg0: i32) -> (i32, i32, i32) {
    %c0_i32 = arith.constant 0 : i32
    %c0_i32_0 = arith.constant 0 : i32
    %c0_i32_1 = arith.constant 0 : i32
    return %arg0, %c0_i32, %c0_i32_0 : i32, i32, i32
  }
  func.func @transform_3(%arg0: i32) -> (i32, i32, i32) {
    %c0_i32 = arith.constant 0 : i32
    %c0_i32_0 = arith.constant 0 : i32
    %c0_i32_1 = arith.constant 0 : i32
    return %arg0, %c0_i32, %c0_i32_0 : i32, i32, i32
  }
  func.func @transform_4(%arg0: i32) -> (i32, i32, i32) {
    %c0_i32 = arith.constant 0 : i32
    %c0_i32_0 = arith.constant 0 : i32
    %c0_i32_1 = arith.constant 0 : i32
    %c0_i32_2 = arith.constant 0 : i32
    return %c0_i32, %c0_i32_0, %c0_i32_1 : i32, i32, i32
  }
  func.func @transform_5(%arg0: i32) -> (i32, i32, i32) {
    %c0_i32 = arith.constant 0 : i32
    %c0_i32_0 = arith.constant 0 : i32
    %c0_i32_1 = arith.constant 0 : i32
    %c0_i32_2 = arith.constant 0 : i32
    return %c0_i32, %c0_i32_0, %c0_i32_1 : i32, i32, i32
  }
  func.func @transform_6(%arg0: i32) -> (i32, i32, i32) {
    %c0_i32 = arith.constant 0 : i32
    %c0_i32_0 = arith.constant 0 : i32
    %c0_i32_1 = arith.constant 0 : i32
    %c0_i32_2 = arith.constant 0 : i32
    return %c0_i32, %c0_i32_0, %c0_i32_1 : i32, i32, i32
  }
  func.func @transform_7(%arg0: i32) -> (i32, i32, i32) {
    %c0_i32 = arith.constant 0 : i32
    %c0_i32_0 = arith.constant 0 : i32
    %c0_i32_1 = arith.constant 0 : i32
    %c0_i32_2 = arith.constant 0 : i32
    return %c0_i32, %c0_i32_0, %c0_i32_1 : i32, i32, i32
  }
  func.func @transform_8(%arg0: i32) -> (i32, i32, i32) {
    %c0_i32 = arith.constant 0 : i32
    %c0_i32_0 = arith.constant 0 : i32
    %c0_i32_1 = arith.constant 0 : i32
    %c0_i32_2 = arith.constant 0 : i32
    return %c0_i32, %c0_i32_0, %c0_i32_1 : i32, i32, i32
  }
  func.func @transform_9(%arg0: i32) -> (i32, i32, i32) {
    %c0_i32 = arith.constant 0 : i32
    %c0_i32_0 = arith.constant 0 : i32
    %c0_i32_1 = arith.constant 0 : i32
    %c0_i32_2 = arith.constant 0 : i32
    return %c0_i32, %c0_i32_0, %c0_i32_1 : i32, i32, i32
  }
  func.func @transform_10(%arg0: i32) -> (i32, i32, i32) {
    %c0_i32 = arith.constant 0 : i32
    %c0_i32_0 = arith.constant 0 : i32
    %c0_i32_1 = arith.constant 0 : i32
    %c0_i32_2 = arith.constant 0 : i32
    return %c0_i32, %c0_i32_0, %c0_i32_1 : i32, i32, i32
  }
  func.func @transform_11(%arg0: i32) -> (i32, i32, i32) {
    %c0_i32 = arith.constant 0 : i32
    %c0_i32_0 = arith.constant 0 : i32
    %c0_i32_1 = arith.constant 0 : i32
    %c0_i32_2 = arith.constant 0 : i32
    return %c0_i32, %c0_i32_0, %c0_i32_1 : i32, i32, i32
  }
  func.func @transform_12(%arg0: i32) -> (i32, i32) {
    %c0_i32 = arith.constant 0 : i32
    %c0_i32_0 = arith.constant 0 : i32
    %c0_i32_1 = arith.constant 0 : i32
    return %c0_i32, %c0_i32_0 : i32, i32
  }
  func.func @transform_13(%arg0: i32) -> (i32, i32) {
    %c0_i32 = arith.constant 0 : i32
    %c0_i32_0 = arith.constant 0 : i32
    %c0_i32_1 = arith.constant 0 : i32
    return %c0_i32, %c0_i32_0 : i32, i32
  }
  func.func @transform_14(%arg0: i32) -> (i32, i32) {
    %c0_i32 = arith.constant 0 : i32
    %c0_i32_0 = arith.constant 0 : i32
    %c0_i32_1 = arith.constant 0 : i32
    return %c0_i32, %c0_i32_0 : i32, i32
  }
  func.func @transform_15(%arg0: i32) -> (i32, i32) {
    %c0_i32 = arith.constant 0 : i32
    %c0_i32_0 = arith.constant 0 : i32
    %c0_i32_1 = arith.constant 0 : i32
    return %c0_i32, %c0_i32_0 : i32, i32
  }
  func.func @transform_16(%arg0: i32) -> (i32, i32) {
    %c0_i32 = arith.constant 0 : i32
    %c0_i32_0 = arith.constant 0 : i32
    %c0_i32_1 = arith.constant 0 : i32
    return %c0_i32, %c0_i32_0 : i32, i32
  }
  func.func @transform_17(%arg0: i32) -> (i32, i32) {
    %c0_i32 = arith.constant 0 : i32
    %c0_i32_0 = arith.constant 0 : i32
    %c0_i32_1 = arith.constant 0 : i32
    return %c0_i32, %c0_i32_0 : i32, i32
  }
  func.func @transform_18(%arg0: i32) -> (i32, i32) {
    %c0_i32 = arith.constant 0 : i32
    %c0_i32_0 = arith.constant 0 : i32
    %c0_i32_1 = arith.constant 0 : i32
    return %c0_i32, %c0_i32_0 : i32, i32
  }
  func.func @transform_19(%arg0: i32) -> (i32, i32) {
    %c0_i32 = arith.constant 0 : i32
    %c0_i32_0 = arith.constant 0 : i32
    %c0_i32_1 = arith.constant 0 : i32
    return %c0_i32, %c0_i32_0 : i32, i32
  }
  func.func @transform_20(%arg0: i32) -> (i32, i32) {
    %c0_i32 = arith.constant 0 : i32
    %c0_i32_0 = arith.constant 0 : i32
    %c0_i32_1 = arith.constant 0 : i32
    return %c0_i32, %c0_i32_0 : i32, i32
  }
  func.func @transform_21(%arg0: i32) -> (i32, i32) {
    %c0_i32 = arith.constant 0 : i32
    %c0_i32_0 = arith.constant 0 : i32
    %c0_i32_1 = arith.constant 0 : i32
    return %c0_i32, %c0_i32_0 : i32, i32
  }
  func.func @transform_22(%arg0: i32) -> (i32, i32, i32) {
    %c0_i32 = arith.constant 0 : i32
    %c0_i32_0 = arith.constant 0 : i32
    %c0_i32_1 = arith.constant 0 : i32
    return %arg0, %c0_i32, %c0_i32_0 : i32, i32, i32
  }
}

</mosaic_0001>

<bundles_post_ra>
// kernel: tpu_custom_call.1
= control target key start
LH: loop header
LB: loop body
LE: loop exit
PB: predicated region body
PF: predicated region fallthrough
CT: control target
= control target key end

     0   :  { %s6595_s0 = inlined_call_operand.vmem [shape: f32[2,8,32], index: 0, kind: input, shape index: {}]   ;;  %s6596_s1 = inlined_call_operand.vmem [shape: f32[2,8,32], index: 1, kind: input, shape index: {}]   ;;  %s6597_s2 = inlined_call_operand.vmem [shape: f32[2,8,8], index: 2, kind: input, shape index: {}]   ;;  %s6598_s3 = inlined_call_operand.vmem [shape: f32[2,8,8], index: 3, kind: input, shape index: {}]   ;;  %s6599_s4 = inlined_call_operand.vmem [shape: f32[4,32,8], index: 4, kind: input, shape index: {}]   ;;  %s6600_s5 = inlined_call_operand.vmem [shape: f32[4,32,8], index: 5, kind: input, shape index: {}]   ;;  %s6601_s6 = inlined_call_operand.vmem [shape: f32[4,32,8], index: 6, kind: input, shape index: {}]   ;;  %s6602_s7 = inlined_call_operand.vmem [shape: f32[4,8,32], index: 7, kind: input, shape index: {}]   ;;  %s6603_s8 = inlined_call_operand.vmem [shape: f32[4,32,8], index: 8, kind: input, shape index: {}]   ;;  %s6604_s9 = inlined_call_operand.vmem [shape: f32[4,32,8], index: 9, kind: input, shape index: {}]   ;;  %s6605_s10 = inlined_call_operand.vmem [shape: f32[4,32,8], index: 10, kind: input, shape index: {}]   ;;  %s6606_s11 = inlined_call_operand.vmem [shape: f32[4,8,32], index: 11, kind: input, shape index: {}]   ;;  %s6607_s12 = inlined_call_operand.vmem [shape: f32[32,64], index: 12, kind: input, shape index: {}]   ;;  %s6608_s13 = inlined_call_operand.vmem [shape: f32[1,64], index: 13, kind: input, shape index: {}]   ;;  %s6609_s14 = inlined_call_operand.vmem [shape: f32[64,32], index: 14, kind: input, shape index: {}]   ;;  %s6610_s15 = inlined_call_operand.vmem [shape: f32[1,32], index: 15, kind: input, shape index: {}]   ;;  %s6611_s16 = inlined_call_operand.vmem [shape: f32[1,32], index: 16, kind: input, shape index: {}]   ;;  %s6612_s17 = inlined_call_operand.vmem [shape: f32[1,32], index: 17, kind: input, shape index: {}]   ;;  %s6613_s18 = inlined_call_operand.vmem [shape: f32[1,32], index: 18, kind: input, shape index: {}]   ;;  %s6614_s19 = inlined_call_operand.vmem [shape: f32[1,32], index: 19, kind: input, shape index: {}]   ;;  %s6615_s20 = inlined_call_operand.vmem [shape: f32[1,32], index: 20, kind: input, shape index: {}]   ;;  %s6616_s21 = inlined_call_operand.vmem [shape: f32[1,32], index: 21, kind: input, shape index: {}]   ;;  %s6617_s22 = inlined_call_operand.hbm [shape: f32[2,8,32], index: 22, kind: output, shape index: {}]  }
   0x1   :  { %6626 = sst [smem:[#allocation9_spill]] %s6595_s0 }
   0x2   :  { %6627 = sst [smem:[#allocation10_spill]] %s6596_s1 }
   0x3   :  { %6628 = sst [smem:[#allocation11_spill]] %s6597_s2 }
   0x4   :  { %6629 = sst [smem:[#allocation12_spill]] %s6598_s3 }
   0x5   :  { %6630 = sst [smem:[#allocation13_spill]] %s6599_s4 }
   0x6   :  { %6631 = sst [smem:[#allocation14_spill]] %s6600_s5 }
   0x7   :  { %6632 = sst [smem:[#allocation15_spill]] %s6601_s6 }
   0x8   :  { %6633 = sst [smem:[#allocation16_spill]] %s6602_s7 }
   0x9   :  { %6634 = sst [smem:[#allocation17_spill]] %s6603_s8 }
   0xa   :  { %6635 = sst [smem:[#allocation18_spill]] %s6604_s9 }
   0xb   :  { %6636 = sst [smem:[#allocation19_spill]] %s6611_s16 }
   0xc   :  { %27 = vsyncpa [#allocation3], 0 }
   0xd   :  { %29 = vsyncpa [#allocation3 + $0x1], 0  ;;  %s5748_s3 = smov 0   ;;  %s5750_s28 = smov 0  }
   0xe   :  { %s5752_s29 = smov 0   ;;  %s5754_s30 = smov 0  }
   0xf LB: > { %6637 = sst [smem:[#allocation5_spill]] %s5624_s29  ;;  %s5769_s4 = sadd.s32 4294967295, %s5628_s30   ;;  %s5628_s30 = sphi %s5754_s30, %s6655_s30   ;;  %s5624_s29 = sphi %s5752_s29, %s6657_s29   ;;  %s5620_s28 = sphi %s5750_s28, %s6659_s28   ;;  %s5616_s3 = sphi %s5748_s3, %s6658_s3  }
  0x10   : > { %s4808_s0 = sadd.s32 4294967294, %s5628_s30   ;;  %s5773_s23 = sadd.s32 1, %s5628_s30  }
  0x11   : > { %6638 = sst [smem:[#allocation6_spill]] %s5773_s23  ;;  %s524_s1 = sadd.s32 1, %s5624_s29 }
  0x12   : > { %s521_s5 = ssub.s32 %s5628_s30, %s5773_s23  ;;  %p534_p0 = scmp.ne.s32.totalorder %s5624_s29, %s5620_s28 }
  0x13   : > { %p522_p1 = scmp.eq.s32.totalorder %s521_s5, 0  ;;  %p535_p2 = scmp.eq.s32.totalorder %s5769_s4, 1 }
  0x14   : > { %p540_p3 = scmp.ne.s32.totalorder %s5620_s28, %s5616_s3  ;;  %p541_p4 = scmp.eq.s32.totalorder %s4808_s0, 1 }
  0x15   : > { %s5784_s24 = scalar_select %p522_p1, %s5624_s29, %s524_s1  }
  0x16   : > { %p5786_p5 = por %p535_p2, %p534_p0  ;;  %p5790_p6 = por %p541_p4, %p540_p3 }
  0x17   : > { %6639 = sst [smem:[#allocation7_spill]] %s5784_s24  ;;  %p4811_p7 = scmp.ge.s32.totalorder %s5628_s30, 1 }
  0x18   : > { %s6641_s25 = scalar_select %p5790_p6, 1, 0 }
  0x19   : > { %p641_p8 = scmp.lt.s32.totalorder %s5628_s30, 3 }
  0x1a   : > { %6642 = sst [smem:[#allocation8_spill]] %s6641_s25 }
  0x1b   : > { %p642_p9 = pnand %p4811_p7, %p641_p8 }
  0x1c   : > { %p714_p10 = scmp.lt.s32.totalorder (!%p642_p9), %s5769_s4, 1  ;;  %s6643_s1 = sld [smem:[#allocation9_spill]] (!%p642_p9) }
  0x1d   : > { %645 = sbr.rel (%p642_p9) target bundleno = 3676 (0xe5c), region = 108  ;;  %s6644_s0 = sld [smem:[#allocation13_spill]] (!%p642_p9) }
  0x1e   : > { %s6645_s16 = sld [smem:[#allocation19_spill]] (!%p642_p9)  ;;  %s711_s29 = sand.u32 (!%p642_p9), 1, %s5620_s28  }
  0x1f   : > { %s6646_s24 = sld [smem:[#allocation14_spill]] (!%p642_p9) }
  0x20   : > { %s6647_s25 = sld [smem:[#allocation15_spill]] (!%p642_p9) }
  0x21   : > { %s6649_s7 = sld [smem:[#allocation16_spill]] (!%p642_p9) }
  0x22   : > { %s715_s26 = scalar_select %p714_p10, %s5769_s4, 1  ;;  %vm736_vm0 = vcmask 261120   ;;  %v5630_v7 = vmov 0.0   ;;  %vm5631_vm1 = vmmov 0   ;;  %v4818_v27 = vld [vmem:[%s6612_s17] ss:$0 sm:$0xff] }
  0x23   : > { %5069 = vmatprep.subr.mxu0 %v5630_v7  ;;  %5080 = vmatprep.subr.mxu1 %v5630_v7  ;;  %v775_v8 = vld [vmem:[%s6644_s0 + $0x18] sm:$0xff]  ;;  %v774_v10 = vld [vmem:[%s6644_s0 + $0x10] sm:$0xff]  ;;  %v773_v12 = vld [vmem:[%s6644_s0 + $0x8] sm:$0xff]  ;;  %vm1669_vm4 = vcmask 64512   ;;  %s6650_s8 = sld [smem:[#allocation17_spill]]  ;;  %vm4615_vm11 = vcmask 523264  }
  0x24   : > { %s5798_s2 = sshll.u32 %s715_s26, 3  ;;  %v779_v9 = vld [vmem:[%s6644_s0 + $0x38] sm:$0xff]  ;;  %5070 = vmatpush3.msra.mxu0 %v775_v8  ;;  %v778_v11 = vld [vmem:[%s6644_s0 + $0x30] sm:$0xff]  ;;  %v777_v13 = vld [vmem:[%s6644_s0 + $0x28] sm:$0xff]  ;;  %5077 = vmatprep.mubr.msk.f32.mxu0 %vm5631_vm1, %v5630_v7  ;;  %s6648_s26 = sld [smem:[#allocation12_spill]] }
  0x25   : > { %s717_s5 = scalar_lea.vmem %s6643_s1, %s5798_s2  ;;  %5081 = vmatpush3.msra.mxu1 %v779_v9  ;;  %5071 = vmatprep.subr.mxu0 %v5630_v7  ;;  %v772_v14 = vld [vmem:[%s6644_s0] sm:$0xff]  ;;  %v783_v30 = vld [vmem:[%s6644_s0 + $0x58] sm:$0xff]  ;;  %v782_v32 = vld [vmem:[%s6644_s0 + $0x50] sm:$0xff]  ;;  %s6651_s9 = sld [smem:[#allocation18_spill]] }
  0x26   : > { %v5804_v0 = vld [vmem:[%s717_s5] sm:$0xff]  ;;  %5082 = vmatprep.subr.mxu1 %v5630_v7  ;;  %5072 = vmatpush3.msra.mxu0 %v774_v10  ;;  %v787_v31 = vld [vmem:[%s6644_s0 + $0x78] sm:$0xff]  ;;  %v786_v33 = vld [vmem:[%s6644_s0 + $0x70] sm:$0xff]  ;;  %s4700_s5 = scalar_lea.sflag [#allocation3], %s711_s29 }
  0x27   : > { %v737_v1 = vsel %vm736_vm0, %v5804_v0, 0.0  ;;  %5083 = vmatpush3.msra.mxu1 %v778_v11  ;;  %5073 = vmatprep.subr.mxu0 %v5630_v7  ;;  %v776_v15 = vld [vmem:[%s6644_s0 + $0x20] sm:$0xff]  ;;  %v781_v34 = vld [vmem:[%s6644_s0 + $0x48] sm:$0xff]  ;;  %v791_v38 = vld [vmem:[%s6646_s24 + $0x18] sm:$0xff] }
  0x28   : > { %738 = vadd.xlane.f32.xlu0 %v737_v1  ;;  %5084 = vmatprep.subr.mxu1 %v5630_v7  ;;  %v4817_v25 = vld [vmem:[%s6645_s16] ss:$0 sm:$0xff]  ;;  %v785_v35 = vld [vmem:[%s6644_s0 + $0x68] sm:$0xff]  ;;  %v795_v39 = vld [vmem:[%s6646_s24 + $0x38] sm:$0xff] }
  0x29   : > { %5074 = vmatpush3.msra.mxu0 %v773_v12  ;;  %5085 = vmatpush3.msra.mxu1 %v777_v13  ;;  %v780_v36 = vld [vmem:[%s6644_s0 + $0x40] sm:$0xff]  ;;  %v790_v40 = vld [vmem:[%s6646_s24 + $0x10] sm:$0xff]  ;;  %v789_v42 = vld [vmem:[%s6646_s24 + $0x8] sm:$0xff] }
  0x2a   : > { %5075 = vmatprep.subr.mxu0 %v5630_v7  ;;  %5086 = vmatprep.subr.mxu1 %v5630_v7  ;;  %v784_v37 = vld [vmem:[%s6644_s0 + $0x60] sm:$0xff]  ;;  %v794_v41 = vld [vmem:[%s6646_s24 + $0x30] sm:$0xff]  ;;  %v793_v43 = vld [vmem:[%s6646_s24 + $0x28] sm:$0xff]  ;;  %s729_s27 = scalar_lea.vmem %s6648_s26, %s5798_s2  ;;  %s4812_s0 = sshll.u32 %s711_s29, 3 }
  0x2b   : > { %5076 = vmatpush3.msra.mxu0 %v772_v14  ;;  %5087 = vmatpush3.msra.mxu1 %v776_v15  ;;  %v788_v44 = vld [vmem:[%s6646_s24] sm:$0xff]  ;;  %v799_v46 = vld [vmem:[%s6646_s24 + $0x58] sm:$0xff]  ;;  %v798_v48 = vld [vmem:[%s6646_s24 + $0x50] sm:$0xff] }
  0x2c   : > { %5088 = vmatprep.mubr.msk.f32.mxu1 %vm5631_vm1, %v5630_v7  ;;  %5091 = vmatprep.subr.mxu0 %v5630_v7  ;;  %v792_v45 = vld [vmem:[%s6646_s24 + $0x20] sm:$0xff]  ;;  %v803_v47 = vld [vmem:[%s6646_s24 + $0x78] sm:$0xff]  ;;  %v802_v49 = vld [vmem:[%s6646_s24 + $0x70] sm:$0xff] }
  0x2d   : > { %5102 = vmatprep.subr.mxu1 %v5630_v7  ;;  %v797_v50 = vld [vmem:[%s6646_s24 + $0x48] sm:$0xff]  ;;  %v796_v52 = vld [vmem:[%s6646_s24 + $0x40] sm:$0xff]  ;;  %v807_v54 = vld [vmem:[%s6647_s25 + $0x18] sm:$0xff] }
  0x2e   : > { %v801_v51 = vld [vmem:[%s6646_s24 + $0x68] sm:$0xff]  ;;  %v800_v53 = vld [vmem:[%s6646_s24 + $0x60] sm:$0xff]  ;;  %v811_v55 = vld [vmem:[%s6647_s25 + $0x38] sm:$0xff] }
  0x2f   : > { %v806_v56 = vld [vmem:[%s6647_s25 + $0x10] sm:$0xff]  ;;  %v805_v58 = vld [vmem:[%s6647_s25 + $0x8] sm:$0xff]  ;;  %v804_v60 = vld [vmem:[%s6647_s25] sm:$0xff] }
  0x30   : > { %v810_v57 = vld [vmem:[%s6647_s25 + $0x30] sm:$0xff]  ;;  %v809_v59 = vld [vmem:[%s6647_s25 + $0x28] sm:$0xff]  ;;  %v808_v61 = vld [vmem:[%s6647_s25 + $0x20] sm:$0xff] }
  0x31   : > { %v815_v62 = vld [vmem:[%s6647_s25 + $0x58] sm:$0xff]  ;;  %v814_v1 = vld [vmem:[%s6647_s25 + $0x50] sm:$0xff] }
  0x32   : > { %v819_v63 = vld [vmem:[%s6647_s25 + $0x78] sm:$0xff] }
  0xb1   : > { %v739_v2 = vpop.xlane.xlu0 %738 }
  0xb2   : > { %v741_v3 = vmul.f32 0.03125, %v739_v2  ;;  %v818_v2 = vld [vmem:[%s6647_s25 + $0x70] sm:$0xff] }
  0xb4   : > { %v742_v4 = vsub.f32 %v5804_v0, %v741_v3  ;;  %v813_v3 = vld [vmem:[%s6647_s25 + $0x48] sm:$0xff] }
  0xb6   : > { %v743_v5 = vmul.f32 %v742_v4, %v742_v4 }
  0xb8   : > { %v744_v6 = vsel %vm736_vm0, %v743_v5, 0.0  ;;  %v812_v5 = vld [vmem:[%s6647_s25 + $0x40] sm:$0xff] }
  0xb9   : > { %745 = vadd.xlane.f32.xlu0 %v744_v6  ;;  %v816_v6 = vld [vmem:[%s6647_s25 + $0x60] sm:$0xff] }
 0x142   : > { %v746_v16 = vpop.xlane.xlu0 %745 }
 0x143   : > { %v747_v17 = vmul.f32 0.032258064, %v746_v16 }
 0x145   : > { %5524 = vrsqrt.f32 %v747_v17  ;;  %vm750_vm2 = vcmp.eq.f32.partialorder %v747_v17, inf  ;;  %v753_v20 = vand.u32 2147483648, %v747_v17  ;;  %vm752_vm3 = vcmp.eq.f32.partialorder %v747_v17, 0.0 }
 0x152   : > { %v5525_v18 = vpop.eup %5524 }
 0x153   : > { %v749_v19 = vmul.f32 %v5525_v18, %v747_v17 }
 0x155   : > { %v751_v21 = vsel %vm750_vm2, %v747_v17, %v749_v19 }
 0x156   : > { %v754_v22 = vsel %vm752_vm3, %v753_v20, %v751_v21 }
 0x157   : > { %v755_v23 = vadd.f32 1e-06, %v754_v22 }
 0x159   : > { %5526 = vrcp.f32 %v755_v23 }
 0x166   : > { %v5527_v24 = vpop.eup %5526 }
 0x167   : > { %v757_v26 = vmul.f32 %v5527_v24, %v742_v4  ;;  %v817_v4 = vld [vmem:[%s6647_s25 + $0x68] sm:$0xff] }
 0x169   : > { %v764_v28 = vmul.f32 %v4817_v25, %v757_v26 }
 0x16b   : > { %v5854_v29 = vadd.f32 %v4818_v27, %v764_v28 }
 0x16d   : > { %5078 = vmatmul.mubr.msk.f32.vlgmr.msra.gmra.mxu0 %vm736_vm0, %v5854_v29  ;;  %5089 = vmatmul.mubr.msk.f32.vlgmr.msra.gmra.mxu1 %vm736_vm0, %v5854_v29 }
 0x16e   : > { %5092 = vmatpush3.msra.mxu0 %v783_v30  ;;  %5103 = vmatpush3.msra.mxu1 %v787_v31 }
 0x16f   : > { %5093 = vmatprep.subr.mxu0 %v5630_v7  ;;  %5104 = vmatprep.subr.mxu1 %v5630_v7 }
 0x170   : > { %5094 = vmatpush3.msra.mxu0 %v782_v32  ;;  %5105 = vmatpush3.msra.mxu1 %v786_v33  ;;  %v733_v32 = vld [vmem:[%s729_s27] sm:$0xff] }
 0x171   : > { %5095 = vmatprep.subr.mxu0 %v5630_v7  ;;  %5106 = vmatprep.subr.mxu1 %v5630_v7  ;;  %vm1667_vm5 = vcmp.eq.f32.partialorder %v733_v32, 0.0 }
 0x172   : > { %5096 = vmatpush3.msra.mxu0 %v781_v34  ;;  %5107 = vmatpush3.msra.mxu1 %v785_v35  ;;  %v1668_v33 = vsel %vm1667_vm5, -1e+09, %v5630_v7 }
 0x173   : > { %5097 = vmatprep.subr.mxu0 %v5630_v7  ;;  %5108 = vmatprep.subr.mxu1 %v5630_v7 }
 0x174   : > { %5098 = vmatpush3.msra.mxu0 %v780_v36  ;;  %5099 = vmatprep.mubr.msk.f32.mxu0 %vm5631_vm1, %v5630_v7 }
 0x175   : > { %5109 = vmatpush3.msra.mxu1 %v784_v37  ;;  %5110 = vmatprep.mubr.msk.f32.mxu1 %vm5631_vm1, %v5630_v7 }
 0x176   : > { %5100 = vmatmul.mubr.msk.f32.vlgmr.msra.gmra.mxu0 %vm736_vm0, %v5854_v29  ;;  %5111 = vmatmul.mubr.msk.f32.vlgmr.msra.gmra.mxu1 %vm736_vm0, %v5854_v29 }
 0x177   : > { %5113 = vmatprep.subr.mxu0 %v5630_v7  ;;  %5124 = vmatprep.subr.mxu1 %v5630_v7 }
 0x178   : > { %5114 = vmatpush3.msra.mxu0 %v791_v38  ;;  %5125 = vmatpush3.msra.mxu1 %v795_v39 }
 0x179   : > { %5115 = vmatprep.subr.mxu0 %v5630_v7  ;;  %5126 = vmatprep.subr.mxu1 %v5630_v7 }
 0x17a   : > { %5116 = vmatpush3.msra.mxu0 %v790_v40  ;;  %5127 = vmatpush3.msra.mxu1 %v794_v41 }
 0x17b   : > { %5117 = vmatprep.subr.mxu0 %v5630_v7  ;;  %5128 = vmatprep.subr.mxu1 %v5630_v7 }
 0x17c   : > { %5118 = vmatpush3.msra.mxu0 %v789_v42  ;;  %5129 = vmatpush3.msra.mxu1 %v793_v43 }
 0x17d   : > { %5119 = vmatprep.subr.mxu0 %v5630_v7  ;;  %5130 = vmatprep.subr.mxu1 %v5630_v7 }
 0x17e   : > { %5120 = vmatpush3.msra.mxu0 %v788_v44  ;;  %5121 = vmatprep.mubr.msk.f32.mxu0 %vm5631_vm1, %v5630_v7 }
 0x17f   : > { %5131 = vmatpush3.msra.mxu1 %v792_v45  ;;  %5132 = vmatprep.mubr.msk.f32.mxu1 %vm5631_vm1, %v5630_v7 }
 0x180   : > { %5122 = vmatmul.mubr.msk.f32.vlgmr.msra.gmra.mxu0 %vm736_vm0, %v5854_v29  ;;  %5133 = vmatmul.mubr.msk.f32.vlgmr.msra.gmra.mxu1 %vm736_vm0, %v5854_v29 }
 0x181   : > { %5135 = vmatprep.subr.mxu0 %v5630_v7  ;;  %5146 = vmatprep.subr.mxu1 %v5630_v7 }
 0x182   : > { %5136 = vmatpush3.msra.mxu0 %v799_v46  ;;  %5147 = vmatpush3.msra.mxu1 %v803_v47 }
 0x183   : > { %5137 = vmatprep.subr.mxu0 %v5630_v7  ;;  %5148 = vmatprep.subr.mxu1 %v5630_v7 }
 0x184   : > { %5138 = vmatpush3.msra.mxu0 %v798_v48  ;;  %5149 = vmatpush3.msra.mxu1 %v802_v49 }
 0x185   : > { %5139 = vmatprep.subr.mxu0 %v5630_v7  ;;  %5150 = vmatprep.subr.mxu1 %v5630_v7 }
 0x186   : > { %5140 = vmatpush3.msra.mxu0 %v797_v50  ;;  %5151 = vmatpush3.msra.mxu1 %v801_v51 }
 0x187   : > { %5141 = vmatprep.subr.mxu0 %v5630_v7  ;;  %5152 = vmatprep.subr.mxu1 %v5630_v7 }
 0x188   : > { %5142 = vmatpush3.msra.mxu0 %v796_v52  ;;  %5143 = vmatprep.mubr.msk.f32.mxu0 %vm5631_vm1, %v5630_v7 }
 0x189   : > { %5153 = vmatpush3.msra.mxu1 %v800_v53  ;;  %5154 = vmatprep.mubr.msk.f32.mxu1 %vm5631_vm1, %v5630_v7 }
 0x18a   : > { %5144 = vmatmul.mubr.msk.f32.vlgmr.msra.gmra.mxu0 %vm736_vm0, %v5854_v29  ;;  %5155 = vmatmul.mubr.msk.f32.vlgmr.msra.gmra.mxu1 %vm736_vm0, %v5854_v29 }
 0x18b   : > { %5157 = vmatprep.subr.mxu0 %v5630_v7  ;;  %5168 = vmatprep.subr.mxu1 %v5630_v7 }
 0x18c   : > { %5158 = vmatpush3.msra.mxu0 %v807_v54  ;;  %5169 = vmatpush3.msra.mxu1 %v811_v55 }
 0x18d   : > { %5159 = vmatprep.subr.mxu0 %v5630_v7  ;;  %5170 = vmatprep.subr.mxu1 %v5630_v7 }
 0x18e   : > { %5160 = vmatpush3.msra.mxu0 %v806_v56  ;;  %5171 = vmatpush3.msra.mxu1 %v810_v57 }
 0x18f   : > { %5161 = vmatprep.subr.mxu0 %v5630_v7  ;;  %5172 = vmatprep.subr.mxu1 %v5630_v7 }
 0x190   : > { %5162 = vmatpush3.msra.mxu0 %v805_v58  ;;  %5173 = vmatpush3.msra.mxu1 %v809_v59 }
 0x191   : > { %5163 = vmatprep.subr.mxu0 %v5630_v7  ;;  %5174 = vmatprep.subr.mxu1 %v5630_v7 }
 0x192   : > { %5164 = vmatpush3.msra.mxu0 %v804_v60  ;;  %5165 = vmatprep.mubr.msk.f32.mxu0 %vm5631_vm1, %v5630_v7 }
 0x193   : > { %5175 = vmatpush3.msra.mxu1 %v808_v61  ;;  %5176 = vmatprep.mubr.msk.f32.mxu1 %vm5631_vm1, %v5630_v7 }
 0x194   : > { %5166 = vmatmul.mubr.msk.f32.vlgmr.msra.gmra.mxu0 %vm736_vm0, %v5854_v29  ;;  %5177 = vmatmul.mubr.msk.f32.vlgmr.msra.gmra.mxu1 %vm736_vm0, %v5854_v29 }
 0x195   : > { %5179 = vmatprep.subr.mxu0 %v5630_v7  ;;  %5190 = vmatprep.subr.mxu1 %v5630_v7 }
 0x196   : > { %5180 = vmatpush3.msra.mxu0 %v815_v62  ;;  %5191 = vmatpush3.msra.mxu1 %v819_v63 }
 0x197   : > { %5181 = vmatprep.subr.mxu0 %v5630_v7  ;;  %5192 = vmatprep.subr.mxu1 %v5630_v7 }
 0x198   : > { %5182 = vmatpush3.msra.mxu0 %v814_v1  ;;  %5193 = vmatpush3.msra.mxu1 %v818_v2 }
 0x199   : > { %5183 = vmatprep.subr.mxu0 %v5630_v7  ;;  %5194 = vmatprep.subr.mxu1 %v5630_v7 }
 0x19a   : > { %5184 = vmatpush3.msra.mxu0 %v813_v3  ;;  %5195 = vmatpush3.msra.mxu1 %v817_v4 }
 0x19b   : > { %5185 = vmatprep.subr.mxu0 %v5630_v7  ;;  %5196 = vmatprep.subr.mxu1 %v5630_v7 }
 0x19c   : > { %5186 = vmatpush3.msra.mxu0 %v812_v5  ;;  %5187 = vmatprep.mubr.msk.f32.mxu0 %vm5631_vm1, %v5630_v7 }
 0x19d   : > { %5197 = vmatpush3.msra.mxu1 %v816_v6  ;;  %5198 = vmatprep.mubr.msk.f32.mxu1 %vm5631_vm1, %v5630_v7 }
 0x19e   : > { %5188 = vmatmul.mubr.msk.f32.vlgmr.msra.gmra.mxu0 %vm736_vm0, %v5854_v29  ;;  %5199 = vmatmul.mubr.msk.f32.vlgmr.msra.gmra.mxu1 %vm736_vm0, %v5854_v29 }
 0x19f   : > { %5201 = vmatprep.subr.mxu0 %v5630_v7  ;;  %5203 = vmatprep.mubr.msk.f32.mxu0 %vm5631_vm1, %v5630_v7 }
 0x1a0   : > { %5216 = vmatprep.subr.mxu1 %v5630_v7  ;;  %5218 = vmatprep.mubr.msk.f32.mxu1 %vm5631_vm1, %v5630_v7 }
 0x22d   : > { %v893_v8 = vpop.f32.mrf.mxu0  ;;  %v963_v9 = vpop.f32.mrf.mxu1 }
 0x22f   : > { %v5079_v10 = vpop.f32.mrf.mxu0  ;;  %v5090_v11 = vpop.f32.mrf.mxu1 }
 0x236   : > { %v1033_v12 = vpop.f32.mrf.mxu0  ;;  %v1103_v13 = vpop.f32.mrf.mxu1 }
 0x238   : > { %v5101_v14 = vpop.f32.mrf.mxu0  ;;  %v5112_v15 = vpop.f32.mrf.mxu1 }
 0x240   : > { %v1173_v16 = vpop.f32.mrf.mxu0  ;;  %v1243_v17 = vpop.f32.mrf.mxu1 }
 0x241   : > { %5202 = vmatpush3.xpose.msk.msra.mxu0 %vm1669_vm4, %v1173_v16 }
 0x242   : > { %v5123_v18 = vpop.f32.mrf.mxu0  ;;  %v5134_v19 = vpop.f32.mrf.mxu1  ;;  %5206 = vmatprep.subr.mxu0 %v5630_v7 }
 0x244   : > { %5204 = vmatmul.mubr.msk.f32.vlgmr.msra.gmra.mxu0 %vm1669_vm4, %v893_v8 }
 0x245   : > { %5207 = vmatpush3.xpose.msk.msra.mxu0 %vm1669_vm4, %v1243_v17  ;;  %5208 = vmatprep.mubr.msk.f32.mxu0 %vm5631_vm1, %v5630_v7 }
 0x246   : > { %5211 = vmatprep.subr.mxu0 %v5630_v7 }
 0x248   : > { %5209 = vmatmul.mubr.msk.f32.vlgmr.msra.gmra.mxu0 %vm1669_vm4, %v963_v9 }
 0x249   : > { %5213 = vmatprep.mubr.msk.f32.mxu0 %vm5631_vm1, %v5630_v7 }
 0x24a   : > { %v1313_v20 = vpop.f32.mrf.mxu0  ;;  %v1383_v21 = vpop.f32.mrf.mxu1 }
 0x24b   : > { %5212 = vmatpush3.xpose.msk.msra.mxu0 %vm1669_vm4, %v1313_v20  ;;  %5217 = vmatpush3.xpose.msk.msra.mxu1 %vm1669_vm4, %v1383_v21  ;;  %v820_v20 = vld [vmem:[%s6649_s7] sm:$0xff]  ;;  %v821_v21 = vld [vmem:[%s6649_s7 + $0x8] sm:$0xff] }
 0x24c   : > { %v5145_v22 = vpop.f32.mrf.mxu0  ;;  %v5156_v23 = vpop.f32.mrf.mxu1  ;;  %5221 = vmatprep.subr.mxu0 %v5630_v7  ;;  %5226 = vmatprep.subr.mxu1 %v5630_v7 }
 0x24d   : > { %v822_v22 = vld [vmem:[%s6649_s7 + $0x10] sm:$0xff] }
 0x24e   : > { %5214 = vmatmul.mubr.msk.f32.vlgmr.msra.gmra.mxu0 %vm1669_vm4, %v1033_v12  ;;  %5219 = vmatmul.mubr.msk.f32.vlgmr.msra.gmra.mxu1 %vm1669_vm4, %v1103_v13 }
 0x24f   : > { %5223 = vmatprep.mubr.msk.f32.mxu0 %vm5631_vm1, %v5630_v7  ;;  %5228 = vmatprep.mubr.msk.f32.mxu1 %vm5631_vm1, %v5630_v7 }
 0x254   : > { %v1453_v24 = vpop.f32.mrf.mxu0  ;;  %v1523_v25 = vpop.f32.mrf.mxu1 }
 0x255   : > { %5222 = vmatpush3.msra.mxu0 %v1453_v24  ;;  %5227 = vmatpush3.msra.mxu1 %v1523_v25  ;;  %v823_v25 = vld [vmem:[%s6649_s7 + $0x18] sm:$0xff]  ;;  %s6652_s7 = sld [smem:[#allocation10_spill]] }
 0x256   : > { %v5167_v26 = vpop.f32.mrf.mxu0  ;;  %v5178_v27 = vpop.f32.mrf.mxu1  ;;  %5231 = vmatprep.subr.mxu0 %v5630_v7  ;;  %5236 = vmatprep.subr.mxu1 %v5630_v7 }
 0x25e   : > { %v6086_v28 = vpop.f32.mrf.mxu0  ;;  %v6088_v29 = vpop.f32.mrf.mxu1 }
 0x260   : > { %v5189_v30 = vpop.f32.mrf.mxu0  ;;  %v5200_v31 = vpop.f32.mrf.mxu1 }
 0x304   : > { %v1742_v34 = vpop.f32.mrf.mxu0 }
 0x305   : > { %v1743_v35 = vadd.f32 %v1742_v34, %v1668_v33 }
 0x306   : > { %v5205_v36 = vpop.f32.mrf.mxu0 }
 0x307   : > { %v1974_v37 = vsel %vm1669_vm4, %v1743_v35, -inf }
 0x308   : > { %1975 = vmax.xlane.f32.xlu1 %v1974_v37  ;;  %v1818_v38 = vpop.f32.mrf.mxu0 }
 0x309   : > { %v1819_v39 = vadd.f32 %v1818_v38, %v1668_v33 }
 0x30a   : > { %v5210_v40 = vpop.f32.mrf.mxu0 }
 0x30b   : > { %v1977_v41 = vsel %vm1669_vm4, %v1819_v39, -inf }
 0x30c   : > { %1978 = vmax.xlane.f32.xlu1 %v1977_v41 }
 0x30e   : > { %v1970_v42 = vpop.f32.mrf.mxu1  ;;  %v1894_v43 = vpop.f32.mrf.mxu0 }
 0x30f   : > { %v1971_v44 = vadd.f32 %v1970_v42, %v1668_v33  ;;  %v1895_v45 = vadd.f32 %v1894_v43, %v1668_v33 }
 0x310   : > { %v5215_v46 = vpop.f32.mrf.mxu0  ;;  %v5220_v47 = vpop.f32.mrf.mxu1 }
 0x311   : > { %v1983_v48 = vsel %vm1669_vm4, %v1971_v44, -inf  ;;  %v1980_v49 = vsel %vm1669_vm4, %v1895_v45, -inf }
 0x312   : > { %1984 = vmax.xlane.f32.xlu1 %v1983_v48  ;;  %1981 = vmax.xlane.f32.xlu0 %v1980_v49 }
 0x391   : > { %v1976_v50 = vpop.xlane.xlu1 %1975 }
 0x392   : > { %v1986_v51 = vsub.f32 %v1743_v35, %v1976_v50 }
 0x394   : > { %v1990_v52 = vmul.f32 1.442695, %v1986_v51 }
 0x395   : > { %v1979_v53 = vpop.xlane.xlu1 %1978 }
 0x396   : > { %5528 = vpow2.f32 %v1990_v52  ;;  %v1987_v54 = vsub.f32 %v1819_v39, %v1979_v53 }
 0x398   : > { %v1992_v55 = vmul.f32 1.442695, %v1987_v54  ;;  %v2649_v54 = vld [vmem:[%s6650_s8 + $0x18] sm:$0xff] }
 0x39a   : > { %5530 = vpow2.f32 %v1992_v55  ;;  %v2648_v55 = vld [vmem:[%s6650_s8 + $0x10] sm:$0xff] }
 0x39b   : > { %v1985_v56 = vpop.xlane.xlu1 %1984  ;;  %v1982_v57 = vpop.xlane.xlu0 %1981 }
 0x39c   : > { %v1989_v58 = vsub.f32 %v1971_v44, %v1985_v56  ;;  %v1988_v59 = vsub.f32 %v1895_v45, %v1982_v57  ;;  %v2652_v56 = vld [vmem:[%s6650_s8 + $0x30] sm:$0xff]  ;;  %v2647_v57 = vld [vmem:[%s6650_s8 + $0x8] sm:$0xff] }
 0x39e   : > { %v1996_v60 = vmul.f32 1.442695, %v1989_v58  ;;  %v1994_v61 = vmul.f32 1.442695, %v1988_v59  ;;  %v2651_v58 = vld [vmem:[%s6650_s8 + $0x28] sm:$0xff]  ;;  %v2646_v59 = vld [vmem:[%s6650_s8] sm:$0xff] }
 0x3a0   : > { %5532 = vpow2.f32 %v1996_v60  ;;  %v2650_v60 = vld [vmem:[%s6650_s8 + $0x20] sm:$0xff] }
 0x3a1   : > { %5534 = vpow2.f32 %v1994_v61 }
 0x3a3   : > { %v5529_v62 = vpop.eup %5528 }
 0x3a4   : > { %v1998_v63 = vsel %vm1669_vm4, %v5529_v62, 0.0 }
 0x3a5   : > { %1999 = vadd.xlane.f32.xlu0 %v1998_v63 }
 0x3a7   : > { %v5531_v1 = vpop.eup %5530 }
 0x3a8   : > { %v2001_v2 = vsel %vm1669_vm4, %v5531_v1, 0.0 }
 0x3a9   : > { %2002 = vadd.xlane.f32.xlu1 %v2001_v2 }
 0x3ad   : > { %v5533_v3 = vpop.eup %5532 }
 0x3ae   : > { %v5535_v4 = vpop.eup %5534  ;;  %v2007_v5 = vsel %vm1669_vm4, %v5533_v3, 0.0 }
 0x3af   : > { %2008 = vadd.xlane.f32.xlu1 %v2007_v5  ;;  %v2004_v6 = vsel %vm1669_vm4, %v5535_v4, 0.0 }
 0x3b0   : > { %2005 = vadd.xlane.f32.xlu0 %v2004_v6 }
 0x42e   : > { %v2000_v8 = vpop.xlane.xlu0 %1999 }
 0x42f   : > { %5536 = vrcp.f32 %v2000_v8  ;;  %v4847_v8 = vld [vmem:[%s6613_s18] ss:$0 sm:$0xff] }
 0x432   : > { %v2003_v9 = vpop.xlane.xlu1 %2002 }
 0x433   : > { %5538 = vrcp.f32 %v2003_v9 }
 0x438   : > { %v2009_v10 = vpop.xlane.xlu1 %2008 }
 0x439   : > { %5540 = vrcp.f32 %v2009_v10  ;;  %v2006_v11 = vpop.xlane.xlu0 %2005  ;;  %v4848_v10 = vld [vmem:[%s6614_s19] ss:$0 sm:$0xff] }
 0x43a   : > { %5542 = vrcp.f32 %v2006_v11 }
 0x43c   : > { %v5537_v12 = vpop.eup %5536 }
 0x43d   : > { %v2014_v13 = vmul.f32 %v5537_v12, %v5529_v62 }
 0x43f   : > { %5224 = vmatmul.mubr.msk.f32.vlgmr.msra.gmra.mxu0 %vm1669_vm4, %v2014_v13  ;;  %v2657_v13 = vld [vmem:[%s6650_s8 + $0x58] sm:$0xff] }
 0x440   : > { %v5539_v14 = vpop.eup %5538  ;;  %5232 = vmatpush3.msra.mxu0 %v6086_v28  ;;  %5233 = vmatprep.mubr.msk.f32.mxu0 %vm5631_vm1, %v5630_v7 }
 0x441   : > { %v2015_v15 = vmul.f32 %v5539_v14, %v5531_v1  ;;  %5241 = vmatprep.subr.mxu0 %v5630_v7  ;;  %v2661_v14 = vld [vmem:[%s6650_s8 + $0x78] sm:$0xff] }
 0x443   : > { %5229 = vmatmul.mubr.msk.f32.vlgmr.msra.gmra.mxu1 %vm1669_vm4, %v2015_v15  ;;  %v2656_v15 = vld [vmem:[%s6650_s8 + $0x50] sm:$0xff] }
 0x444   : > { %5237 = vmatpush3.msra.mxu1 %v6088_v29  ;;  %5238 = vmatprep.mubr.msk.f32.mxu1 %vm5631_vm1, %v5630_v7 }
 0x445   : > { %5246 = vmatprep.subr.mxu1 %v5630_v7 }
 0x446   : > { %v5541_v16 = vpop.eup %5540 }
 0x447   : > { %v5543_v17 = vpop.eup %5542  ;;  %v2017_v18 = vmul.f32 %v5541_v16, %v5533_v3  ;;  %v2660_v16 = vld [vmem:[%s6650_s8 + $0x70] sm:$0xff] }
 0x448   : > { %v2016_v19 = vmul.f32 %v5543_v17, %v5535_v4  ;;  %v2655_v17 = vld [vmem:[%s6650_s8 + $0x48] sm:$0xff] }
 0x449   : > { %5239 = vmatmul.mubr.msk.f32.vlgmr.msra.gmra.mxu1 %vm1669_vm4, %v2017_v18  ;;  %v2659_v18 = vld [vmem:[%s6650_s8 + $0x68] sm:$0xff] }
 0x44a   : > { %5234 = vmatmul.mubr.msk.f32.vlgmr.msra.gmra.mxu0 %vm1669_vm4, %v2016_v19  ;;  %5248 = vmatprep.mubr.msk.f32.mxu1 %vm5631_vm1, %v5630_v7  ;;  %v2654_v19 = vld [vmem:[%s6650_s8 + $0x40] sm:$0xff] }
 0x44b   : > { %5243 = vmatprep.mubr.msk.f32.mxu0 %vm5631_vm1, %v5630_v7  ;;  %5242 = vmatpush3.msra.mxu0 %v820_v20  ;;  %v2658_v20 = vld [vmem:[%s6650_s8 + $0x60] sm:$0xff] }
 0x44c   : > { %5251 = vmatprep.subr.mxu0 %v5630_v7  ;;  %5247 = vmatpush3.msra.mxu1 %v821_v21  ;;  %v2665_v21 = vld [vmem:[%s6651_s9 + $0x18] sm:$0xff] }
 0x44d   : > { %5256 = vmatprep.subr.mxu1 %v5630_v7 }
 0x4ff   : > { %v2087_v23 = vpop.f32.mrf.mxu0 }
 0x500   : > { %5244 = vmatmul.mubr.msk.f32.vlgmr.msra.gmra.mxu0 %vm1669_vm4, %v2087_v23  ;;  %v2664_v23 = vld [vmem:[%s6651_s9 + $0x10] sm:$0xff] }
 0x501   : > { %v5225_v24 = vpop.f32.mrf.mxu0  ;;  %5252 = vmatpush3.msra.mxu0 %v822_v22  ;;  %5253 = vmatprep.mubr.msk.f32.mxu0 %vm5631_vm1, %v5630_v7  ;;  %v2669_v22 = vld [vmem:[%s6651_s9 + $0x38] sm:$0xff] }
 0x502   : > { %5261 = vmatprep.subr.mxu0 %v5630_v7  ;;  %v2668_v24 = vld [vmem:[%s6651_s9 + $0x30] sm:$0xff] }
 0x503   : > { %v2160_v26 = vpop.f32.mrf.mxu1 }
 0x504   : > { %5249 = vmatmul.mubr.msk.f32.vlgmr.msra.gmra.mxu1 %vm1669_vm4, %v2160_v26  ;;  %v2667_v26 = vld [vmem:[%s6651_s9 + $0x28] sm:$0xff] }
 0x505   : > { %v5230_v27 = vpop.f32.mrf.mxu1  ;;  %5257 = vmatpush3.msra.mxu1 %v823_v25  ;;  %5258 = vmatprep.mubr.msk.f32.mxu1 %vm5631_vm1, %v5630_v7  ;;  %v2663_v25 = vld [vmem:[%s6651_s9 + $0x8] sm:$0xff] }
 0x506   : > { %5272 = vmatprep.subr.mxu1 %v5630_v7  ;;  %v2662_v27 = vld [vmem:[%s6651_s9] sm:$0xff] }
 0x509   : > { %v2306_v28 = vpop.f32.mrf.mxu1 }
 0x50a   : > { %v2233_v29 = vpop.f32.mrf.mxu0  ;;  %5259 = vmatmul.mubr.msk.f32.vlgmr.msra.gmra.mxu1 %vm1669_vm4, %v2306_v28  ;;  %v2666_v28 = vld [vmem:[%s6651_s9 + $0x20] sm:$0xff] }
 0x50b   : > { %5254 = vmatmul.mubr.msk.f32.vlgmr.msra.gmra.mxu0 %vm1669_vm4, %v2233_v29  ;;  %v5240_v30 = vpop.f32.mrf.mxu1  ;;  %5280 = vmatprep.mubr.msk.f32.mxu1 %vm5631_vm1, %v5630_v7 }
 0x50c   : > { %v5235_v31 = vpop.f32.mrf.mxu0  ;;  %5269 = vmatprep.mubr.msk.f32.mxu0 %vm5631_vm1, %v5630_v7  ;;  %5262 = vmatpush3.msra.mxu0 %v2649_v54  ;;  %v2673_v30 = vld [vmem:[%s6651_s9 + $0x58] sm:$0xff]  ;;  %v2690_v54 = vld [vmem:[%s6605_s10 + $0x60] sm:$0xff] }
 0x50d   : > { %5263 = vmatprep.subr.mxu0 %v5630_v7  ;;  %v2677_v31 = vld [vmem:[%s6651_s9 + $0x78] sm:$0xff] }
 0x50e   : > { %5264 = vmatpush3.msra.mxu0 %v2648_v55 }
 0x50f   : > { %5265 = vmatprep.subr.mxu0 %v5630_v7 }
 0x510   : > { %5266 = vmatpush3.msra.mxu0 %v2647_v57 }
 0x511   : > { %5267 = vmatprep.subr.mxu0 %v5630_v7 }
 0x512   : > { %5268 = vmatpush3.msra.mxu0 %v2646_v59 }
 0x513   : > { %5283 = vmatprep.subr.mxu0 %v5630_v7 }
 0x5c0   : > { %v2379_v32 = vpop.f32.mrf.mxu0 }
 0x5c1   : > { %v2602_v37 = vsel %vm736_vm0, %v2379_v32, 0.0  ;;  %v2672_v32 = vld [vmem:[%s6651_s9 + $0x50] sm:$0xff] }
 0x5c2   : > { %v5245_v33 = vpop.f32.mrf.mxu0 }
 0x5c3   : > { %v2676_v33 = vld [vmem:[%s6651_s9 + $0x70] sm:$0xff] }
 0x5c4   : > { %v2452_v34 = vpop.f32.mrf.mxu1 }
 0x5c5   : > { %v2603_v36 = vsel %vm736_vm0, %v2452_v34, 0.0  ;;  %v2671_v34 = vld [vmem:[%s6651_s9 + $0x48] sm:$0xff] }
 0x5c6   : > { %v5250_v35 = vpop.f32.mrf.mxu1  ;;  %v2604_v39 = vadd.f32 %v2603_v36, %v2602_v37  ;;  %v2670_v36 = vld [vmem:[%s6651_s9 + $0x40] sm:$0xff] }
 0x5c7   : > { %v2675_v35 = vld [vmem:[%s6651_s9 + $0x68] sm:$0xff]  ;;  %v2674_v37 = vld [vmem:[%s6651_s9 + $0x60] sm:$0xff] }
 0x5ca   : > { %v2598_v38 = vpop.f32.mrf.mxu1 }
 0x5cb   : > { %v2525_v40 = vpop.f32.mrf.mxu0  ;;  %v2607_v45 = vsel %vm736_vm0, %v2598_v38, 0.0  ;;  %v2681_v38 = vld [vmem:[%s6605_s10 + $0x18] sm:$0xff] }
 0x5cc   : > { %v2605_v41 = vsel %vm736_vm0, %v2525_v40, 0.0  ;;  %v5260_v42 = vpop.f32.mrf.mxu1  ;;  %v2680_v40 = vld [vmem:[%s6605_s10 + $0x10] sm:$0xff] }
 0x5cd   : > { %v2606_v43 = vadd.f32 %v2605_v41, %v2604_v39  ;;  %v5255_v44 = vpop.f32.mrf.mxu0  ;;  %v2685_v39 = vld [vmem:[%s6605_s10 + $0x38] sm:$0xff]  ;;  %v2684_v41 = vld [vmem:[%s6605_s10 + $0x30] sm:$0xff]  ;;  %v2679_v42 = vld [vmem:[%s6605_s10 + $0x8] sm:$0xff] }
 0x5ce   : > { %v2678_v44 = vld [vmem:[%s6605_s10] sm:$0xff] }
 0x5cf   : > { %v2608_v46 = vadd.f32 %v2607_v45, %v2606_v43  ;;  %v2683_v43 = vld [vmem:[%s6605_s10 + $0x28] sm:$0xff]  ;;  %v2682_v45 = vld [vmem:[%s6605_s10 + $0x20] sm:$0xff] }
 0x5d1   : > { %v6152_v47 = vadd.f32 %v2608_v46, %v5804_v0  ;;  %v2653_v0 = vld [vmem:[%s6650_s8 + $0x38] sm:$0xff]  ;;  %s721_s8 = scalar_lea.vmem %s6652_s7, %s5798_s2  ;;  %s6653_s7 = sld [smem:[#allocation11_spill]] }
 0x5d2   : > { %5273 = vmatpush3.msra.mxu1 %v2653_v0  ;;  %v6268_v29 = vld [vmem:[%s721_s8] sm:$0xff]  ;;  %v2689_v46 = vld [vmem:[%s6605_s10 + $0x58] sm:$0xff] }
 0x5d3   : > { %v2612_v48 = vsel %vm736_vm0, %v6152_v47, 0.0  ;;  %5274 = vmatprep.subr.mxu1 %v5630_v7 }
 0x5d4   : > { %2613 = vadd.xlane.f32.xlu0 %v2612_v48  ;;  %5275 = vmatpush3.msra.mxu1 %v2652_v56  ;;  %v2693_v48 = vld [vmem:[%s6605_s10 + $0x78] sm:$0xff] }
 0x5d5   : > { %5276 = vmatprep.subr.mxu1 %v5630_v7 }
 0x5d6   : > { %5277 = vmatpush3.msra.mxu1 %v2651_v58 }
 0x5d7   : > { %5278 = vmatprep.subr.mxu1 %v5630_v7  ;;  %s725_s26 = scalar_lea.vmem %s6653_s7, %s5798_s2  ;;  %s4884_s7 = sshll.u32 %s5769_s4, 7 }
 0x5d8   : > { %5279 = vmatpush3.msra.mxu1 %v2650_v60  ;;  %s4711_s8 = scalar_lea.hbm %s6617_s22, %s4884_s7  ;;  %s5632_s4 = smov [#allocation2]  }
 0x5d9   : > { %5294 = vmatprep.subr.mxu1 %v5630_v7 }
 0x65d   : > { %v2614_v49 = vpop.xlane.xlu0 %2613 }
 0x65e   : > { %v2615_v50 = vmul.f32 0.03125, %v2614_v49  ;;  %v2688_v49 = vld [vmem:[%s6605_s10 + $0x50] sm:$0xff] }
 0x660   : > { %v2616_v51 = vsub.f32 %v6152_v47, %v2615_v50  ;;  %v2692_v50 = vld [vmem:[%s6605_s10 + $0x70] sm:$0xff] }
 0x662   : > { %v2617_v52 = vmul.f32 %v2616_v51, %v2616_v51 }
 0x664   : > { %v2618_v53 = vsel %vm736_vm0, %v2617_v52, 0.0  ;;  %v2691_v52 = vld [vmem:[%s6605_s10 + $0x68] sm:$0xff] }
 0x665   : > { %2619 = vadd.xlane.f32.xlu1 %v2618_v53  ;;  %v2686_v53 = vld [vmem:[%s6605_s10 + $0x40] sm:$0xff] }
 0x6ee   : > { %v2620_v61 = vpop.xlane.xlu1 %2619 }
 0x6ef   : > { %v2621_v62 = vmul.f32 0.032258064, %v2620_v61 }
 0x6f1   : > { %5544 = vrsqrt.f32 %v2621_v62  ;;  %vm2624_vm6 = vcmp.eq.f32.partialorder %v2621_v62, inf  ;;  %v2627_v2 = vand.u32 2147483648, %v2621_v62  ;;  %vm2626_vm7 = vcmp.eq.f32.partialorder %v2621_v62, 0.0 }
 0x6fe   : > { %v5545_v63 = vpop.eup %5544 }
 0x6ff   : > { %v2623_v1 = vmul.f32 %v5545_v63, %v2621_v62 }
 0x701   : > { %v2625_v3 = vsel %vm2624_vm6, %v2621_v62, %v2623_v1 }
 0x702   : > { %v2628_v4 = vsel %vm2626_vm7, %v2627_v2, %v2625_v3 }
 0x703   : > { %v2629_v5 = vadd.f32 1e-06, %v2628_v4 }
 0x705   : > { %5546 = vrcp.f32 %v2629_v5 }
 0x712   : > { %v5547_v6 = vpop.eup %5546 }
 0x713   : > { %v2631_v9 = vmul.f32 %v5547_v6, %v2616_v51  ;;  %v2687_v51 = vld [vmem:[%s6605_s10 + $0x48] sm:$0xff] }
 0x715   : > { %v2638_v11 = vmul.f32 %v4847_v8, %v2631_v9 }
 0x717   : > { %v2645_v12 = vadd.f32 %v4848_v10, %v2638_v11 }
 0x719   : > { %5270 = vmatmul.mubr.msk.f32.vlgmr.msra.gmra.mxu0 %vm736_vm0, %v2645_v12  ;;  %5281 = vmatmul.mubr.msk.f32.vlgmr.msra.gmra.mxu1 %vm736_vm0, %v2645_v12 }
 0x71a   : > { %5284 = vmatpush3.msra.mxu0 %v2657_v13  ;;  %5295 = vmatpush3.msra.mxu1 %v2661_v14 }
 0x71b   : > { %5285 = vmatprep.subr.mxu0 %v5630_v7  ;;  %5296 = vmatprep.subr.mxu1 %v5630_v7 }
 0x71c   : > { %5286 = vmatpush3.msra.mxu0 %v2656_v15  ;;  %5297 = vmatpush3.msra.mxu1 %v2660_v16  ;;  %v732_v16 = vld [vmem:[%s725_s26] sm:$0xff]  ;;  %s713_s26 = scalar_lea.vmem [#allocation2], %s4812_s0  ;;  %s5572_s0 = sshll.u32 %s5632_s4, 4  ;;  %s5573_s0 = int_to_ptr.vmem [resolvable:$false] %s5572_s0 }
 0x71d   : > { %5287 = vmatprep.subr.mxu0 %v5630_v7  ;;  %5298 = vmatprep.subr.mxu1 %v5630_v7  ;;  %vm3544_vm8 = vcmp.eq.f32.partialorder %v732_v16, 0.0  ;;  %s4713_s2 = sshll.u32 %s713_s26, 4  ;;  %s5574_s16 = scalar_lea.vmem %s5573_s0, 256  ;;  %s4714_s2 = int_to_ptr.vmem [resolvable:$true] %s4713_s2 }
 0x71e   : > { %5288 = vmatpush3.msra.mxu0 %v2655_v17  ;;  %5299 = vmatpush3.msra.mxu1 %v2659_v18  ;;  %v3545_v17 = vsel %vm3544_vm8, -1e+09, %v5630_v7  ;;  %s5568_s9 = scalar_lea.vmem %s4714_s2, 128  ;;  %p5575_p0 = scmp.lt.s32.totalorder %s4714_s2, %s5573_s0 }
 0x71f   : > { %5289 = vmatprep.subr.mxu0 %v5630_v7  ;;  %5300 = vmatprep.subr.mxu1 %v5630_v7  ;;  %p5569_p11 = scmp.ne.s32.totalorder %s4714_s2, %s5568_s9  ;;  %p5576_p1 = scmp.lt.s32.totalorder %s5574_s16, %s5568_s9 }
 0x720   : > { %5290 = vmatpush3.msra.mxu0 %v2654_v19  ;;  %5291 = vmatprep.mubr.msk.f32.mxu0 %vm5631_vm1, %v5630_v7 }
 0x721   : > { %5301 = vmatpush3.msra.mxu1 %v2658_v20  ;;  %5302 = vmatprep.mubr.msk.f32.mxu1 %vm5631_vm1, %v5630_v7  ;;  %p5570_p12 = pnand %p5569_p11, %p5786_p5  ;;  %p5577_p2 = por %p5576_p1, %p5575_p0 }
 0x722   : > { %5292 = vmatmul.mubr.msk.f32.vlgmr.msra.gmra.mxu0 %vm736_vm0, %v2645_v12  ;;  %5303 = vmatmul.mubr.msk.f32.vlgmr.msra.gmra.mxu1 %vm736_vm0, %v2645_v12 }
 0x723   : > { %5305 = vmatprep.subr.mxu0 %v5630_v7  ;;  %5316 = vmatprep.subr.mxu1 %v5630_v7  ;;  %p5571_p13 = pneg %p5570_p12 }
 0x724   : > { %5306 = vmatpush3.msra.mxu0 %v2665_v21  ;;  %5317 = vmatpush3.msra.mxu1 %v2669_v22 }
 0x725   : > { %5307 = vmatprep.subr.mxu0 %v5630_v7  ;;  %5318 = vmatprep.subr.mxu1 %v5630_v7  ;;  %p5578_p3 = pnand %p5577_p2, %p5571_p13 }
 0x726   : > { %5308 = vmatpush3.msra.mxu0 %v2664_v23  ;;  %5319 = vmatpush3.msra.mxu1 %v2668_v24 }
 0x727   : > { %5309 = vmatprep.subr.mxu0 %v5630_v7  ;;  %5320 = vmatprep.subr.mxu1 %v5630_v7 }
 0x728   : > { %5310 = vmatpush3.msra.mxu0 %v2663_v25  ;;  %5321 = vmatpush3.msra.mxu1 %v2667_v26 }
 0x729   : > { %5311 = vmatprep.subr.mxu0 %v5630_v7  ;;  %5322 = vmatprep.subr.mxu1 %v5630_v7 }
 0x72a   : > { %5312 = vmatpush3.msra.mxu0 %v2662_v27  ;;  %5313 = vmatprep.mubr.msk.f32.mxu0 %vm5631_vm1, %v5630_v7 }
 0x72b   : > { %5323 = vmatpush3.msra.mxu1 %v2666_v28  ;;  %5324 = vmatprep.mubr.msk.f32.mxu1 %vm5631_vm1, %v5630_v7 }
 0x72c   : > { %5314 = vmatmul.mubr.msk.f32.vlgmr.msra.gmra.mxu0 %vm736_vm0, %v6268_v29  ;;  %5325 = vmatmul.mubr.msk.f32.vlgmr.msra.gmra.mxu1 %vm736_vm0, %v6268_v29 }
 0x72d   : > { %5327 = vmatprep.subr.mxu0 %v5630_v7  ;;  %5338 = vmatprep.subr.mxu1 %v5630_v7 }
 0x72e   : > { %5328 = vmatpush3.msra.mxu0 %v2673_v30  ;;  %5339 = vmatpush3.msra.mxu1 %v2677_v31 }
 0x72f   : > { %5329 = vmatprep.subr.mxu0 %v5630_v7  ;;  %5340 = vmatprep.subr.mxu1 %v5630_v7 }
 0x730   : > { %5330 = vmatpush3.msra.mxu0 %v2672_v32  ;;  %5341 = vmatpush3.msra.mxu1 %v2676_v33 }
 0x731   : > { %5331 = vmatprep.subr.mxu0 %v5630_v7  ;;  %5342 = vmatprep.subr.mxu1 %v5630_v7 }
 0x732   : > { %5332 = vmatpush3.msra.mxu0 %v2671_v34  ;;  %5343 = vmatpush3.msra.mxu1 %v2675_v35 }
 0x733   : > { %5333 = vmatprep.subr.mxu0 %v5630_v7  ;;  %5344 = vmatprep.subr.mxu1 %v5630_v7 }
 0x734   : > { %5334 = vmatpush3.msra.mxu0 %v2670_v36  ;;  %5335 = vmatprep.mubr.msk.f32.mxu0 %vm5631_vm1, %v5630_v7 }
 0x735   : > { %5345 = vmatpush3.msra.mxu1 %v2674_v37  ;;  %5346 = vmatprep.mubr.msk.f32.mxu1 %vm5631_vm1, %v5630_v7 }
 0x736   : > { %5336 = vmatmul.mubr.msk.f32.vlgmr.msra.gmra.mxu0 %vm736_vm0, %v6268_v29  ;;  %5347 = vmatmul.mubr.msk.f32.vlgmr.msra.gmra.mxu1 %vm736_vm0, %v6268_v29 }
 0x737   : > { %5349 = vmatprep.subr.mxu0 %v5630_v7  ;;  %5360 = vmatprep.subr.mxu1 %v5630_v7 }
 0x738   : > { %5357 = vmatprep.mubr.msk.f32.mxu0 %vm5631_vm1, %v5630_v7  ;;  %5368 = vmatprep.mubr.msk.f32.mxu1 %vm5631_vm1, %v5630_v7 }
 0x739   : > { %5350 = vmatpush3.msra.mxu0 %v2681_v38  ;;  %5361 = vmatpush3.msra.mxu1 %v2685_v39 }
 0x73a   : > { %5351 = vmatprep.subr.mxu0 %v5630_v7  ;;  %5362 = vmatprep.subr.mxu1 %v5630_v7 }
 0x73b   : > { %5352 = vmatpush3.msra.mxu0 %v2680_v40  ;;  %5363 = vmatpush3.msra.mxu1 %v2684_v41 }
 0x73c   : > { %5353 = vmatprep.subr.mxu0 %v5630_v7  ;;  %5364 = vmatprep.subr.mxu1 %v5630_v7 }
 0x73d   : > { %5354 = vmatpush3.msra.mxu0 %v2679_v42  ;;  %5365 = vmatpush3.msra.mxu1 %v2683_v43 }
 0x73e   : > { %5355 = vmatprep.subr.mxu0 %v5630_v7  ;;  %5366 = vmatprep.subr.mxu1 %v5630_v7 }
 0x73f   : > { %5356 = vmatpush3.msra.mxu0 %v2678_v44  ;;  %5367 = vmatpush3.msra.mxu1 %v2682_v45 }
 0x740   : > { %5371 = vmatprep.subr.mxu0 %v5630_v7  ;;  %5382 = vmatprep.subr.mxu1 %v5630_v7 }
 0x741   : > { %5358 = vmatmul.mubr.msk.f32.vlgmr.msra.gmra.mxu0 %vm736_vm0, %v6268_v29  ;;  %5369 = vmatmul.mubr.msk.f32.vlgmr.msra.gmra.mxu1 %vm736_vm0, %v6268_v29 }
 0x742   : > { %5372 = vmatpush3.msra.mxu0 %v2689_v46  ;;  %5383 = vmatpush3.msra.mxu1 %v2693_v48 }
 0x743   : > { %5373 = vmatprep.subr.mxu0 %v5630_v7  ;;  %5384 = vmatprep.subr.mxu1 %v5630_v7 }
 0x744   : > { %5374 = vmatpush3.msra.mxu0 %v2688_v49  ;;  %5385 = vmatpush3.msra.mxu1 %v2692_v50 }
 0x745   : > { %5375 = vmatprep.subr.mxu0 %v5630_v7  ;;  %5386 = vmatprep.subr.mxu1 %v5630_v7 }
 0x746   : > { %5376 = vmatpush3.msra.mxu0 %v2687_v51  ;;  %5387 = vmatpush3.msra.mxu1 %v2691_v52 }
 0x747   : > { %5377 = vmatprep.subr.mxu0 %v5630_v7  ;;  %5388 = vmatprep.subr.mxu1 %v5630_v7 }
 0x748   : > { %5378 = vmatpush3.msra.mxu0 %v2686_v53  ;;  %5379 = vmatprep.mubr.msk.f32.mxu0 %vm5631_vm1, %v5630_v7 }
 0x749   : > { %5389 = vmatpush3.msra.mxu1 %v2690_v54  ;;  %5390 = vmatprep.mubr.msk.f32.mxu1 %vm5631_vm1, %v5630_v7 }
 0x74a   : > { %5380 = vmatmul.mubr.msk.f32.vlgmr.msra.gmra.mxu0 %vm736_vm0, %v6268_v29  ;;  %5391 = vmatmul.mubr.msk.f32.vlgmr.msra.gmra.mxu1 %vm736_vm0, %v6268_v29 }
 0x74b   : > { %5393 = vmatprep.subr.mxu0 %v5630_v7  ;;  %5398 = vmatprep.subr.mxu1 %v5630_v7 }
 0x74c   : > { %5395 = vmatprep.mubr.msk.f32.mxu0 %vm5631_vm1, %v5630_v7  ;;  %5400 = vmatprep.mubr.msk.f32.mxu1 %vm5631_vm1, %v5630_v7 }
 0x7d9   : > { %v2767_v0 = vpop.f32.mrf.mxu0  ;;  %v2837_v55 = vpop.f32.mrf.mxu1 }
 0x7db   : > { %v5271_v56 = vpop.f32.mrf.mxu0  ;;  %v5282_v57 = vpop.f32.mrf.mxu1 }
 0x7e2   : > { %v2907_v58 = vpop.f32.mrf.mxu0  ;;  %v2977_v59 = vpop.f32.mrf.mxu1 }
 0x7e4   : > { %v5293_v60 = vpop.f32.mrf.mxu0  ;;  %v5304_v61 = vpop.f32.mrf.mxu1 }
 0x7ec   : > { %v3050_v62 = vpop.f32.mrf.mxu0  ;;  %v3120_v63 = vpop.f32.mrf.mxu1 }
 0x7ed   : > { %5394 = vmatpush3.xpose.msk.msra.mxu0 %vm1669_vm4, %v3050_v62  ;;  %5399 = vmatpush3.xpose.msk.msra.mxu1 %vm1669_vm4, %v3120_v63 }
 0x7ee   : > { %v5315_v1 = vpop.f32.mrf.mxu0  ;;  %v5326_v2 = vpop.f32.mrf.mxu1  ;;  %5403 = vmatprep.subr.mxu0 %v5630_v7  ;;  %5408 = vmatprep.subr.mxu1 %v5630_v7 }
 0x7f0   : > { %5396 = vmatmul.mubr.msk.f32.vlgmr.msra.gmra.mxu0 %vm1669_vm4, %v2767_v0  ;;  %5401 = vmatmul.mubr.msk.f32.vlgmr.msra.gmra.mxu1 %vm1669_vm4, %v2837_v55 }
 0x7f1   : > { %5405 = vmatprep.mubr.msk.f32.mxu0 %vm5631_vm1, %v5630_v7  ;;  %5410 = vmatprep.mubr.msk.f32.mxu1 %vm5631_vm1, %v5630_v7 }
 0x7f6   : > { %v3190_v3 = vpop.f32.mrf.mxu0  ;;  %v3260_v4 = vpop.f32.mrf.mxu1 }
 0x7f7   : > { %5404 = vmatpush3.xpose.msk.msra.mxu0 %vm1669_vm4, %v3190_v3  ;;  %5409 = vmatpush3.xpose.msk.msra.mxu1 %vm1669_vm4, %v3260_v4  ;;  %v2694_v3 = vld [vmem:[%s6606_s11] sm:$0xff]  ;;  %v2695_v4 = vld [vmem:[%s6606_s11 + $0x8] sm:$0xff] }
 0x7f8   : > { %v5337_v5 = vpop.f32.mrf.mxu0  ;;  %v5348_v6 = vpop.f32.mrf.mxu1  ;;  %5413 = vmatprep.subr.mxu0 %v5630_v7  ;;  %5418 = vmatprep.subr.mxu1 %v5630_v7 }
 0x7f9   : > { %v2697_v5 = vld [vmem:[%s6606_s11 + $0x18] sm:$0xff] }
 0x7fa   : > { %5406 = vmatmul.mubr.msk.f32.vlgmr.msra.gmra.mxu0 %vm1669_vm4, %v2907_v58  ;;  %5411 = vmatmul.mubr.msk.f32.vlgmr.msra.gmra.mxu1 %vm1669_vm4, %v2977_v59 }
 0x7fb   : > { %5415 = vmatprep.mubr.msk.f32.mxu0 %vm5631_vm1, %v5630_v7  ;;  %5420 = vmatprep.mubr.msk.f32.mxu1 %vm5631_vm1, %v5630_v7 }
 0x801   : > { %v3330_v8 = vpop.f32.mrf.mxu0  ;;  %v3400_v9 = vpop.f32.mrf.mxu1 }
 0x802   : > { %5414 = vmatpush3.msra.mxu0 %v3330_v8  ;;  %5419 = vmatpush3.msra.mxu1 %v3400_v9  ;;  %v2696_v8 = vld [vmem:[%s6606_s11 + $0x10] sm:$0xff] }
 0x803   : > { %v5359_v10 = vpop.f32.mrf.mxu0  ;;  %v5370_v11 = vpop.f32.mrf.mxu1  ;;  %5423 = vmatprep.subr.mxu0 %v5630_v7  ;;  %5428 = vmatprep.subr.mxu1 %v5630_v7 }
 0x80a   : > { %v6428_v12 = vpop.f32.mrf.mxu0  ;;  %v6430_v13 = vpop.f32.mrf.mxu1 }
 0x80c   : > { %v5381_v14 = vpop.f32.mrf.mxu0  ;;  %v5392_v15 = vpop.f32.mrf.mxu1 }
 0x8b0   : > { %v3618_v18 = vpop.f32.mrf.mxu0  ;;  %v3694_v19 = vpop.f32.mrf.mxu1 }
 0x8b1   : > { %v3619_v20 = vadd.f32 %v3618_v18, %v3545_v17  ;;  %v3695_v21 = vadd.f32 %v3694_v19, %v3545_v17 }
 0x8b2   : > { %v5397_v22 = vpop.f32.mrf.mxu0  ;;  %v5402_v23 = vpop.f32.mrf.mxu1 }
 0x8b3   : > { %v3853_v24 = vsel %vm1669_vm4, %v3695_v21, -inf  ;;  %v3850_v25 = vsel %vm1669_vm4, %v3619_v20, -inf }
 0x8b4   : > { %3854 = vmax.xlane.f32.xlu1 %v3853_v24  ;;  %3851 = vmax.xlane.f32.xlu0 %v3850_v25 }
 0x8ba   : > { %v3770_v26 = vpop.f32.mrf.mxu0  ;;  %v3846_v27 = vpop.f32.mrf.mxu1 }
 0x8bb   : > { %v3771_v28 = vadd.f32 %v3770_v26, %v3545_v17  ;;  %v3847_v29 = vadd.f32 %v3846_v27, %v3545_v17 }
 0x8bc   : > { %v5407_v30 = vpop.f32.mrf.mxu0  ;;  %v5412_v31 = vpop.f32.mrf.mxu1 }
 0x8bd   : > { %v3859_v32 = vsel %vm1669_vm4, %v3847_v29, -inf  ;;  %v3856_v33 = vsel %vm1669_vm4, %v3771_v28, -inf }
 0x8be   : > { %3860 = vmax.xlane.f32.xlu1 %v3859_v32  ;;  %3857 = vmax.xlane.f32.xlu0 %v3856_v33 }
 0x93d   : > { %v3855_v34 = vpop.xlane.xlu1 %3854  ;;  %v3852_v35 = vpop.xlane.xlu0 %3851 }
 0x93e   : > { %v3863_v36 = vsub.f32 %v3695_v21, %v3855_v34  ;;  %v3862_v37 = vsub.f32 %v3619_v20, %v3852_v35 }
 0x940   : > { %v3868_v38 = vmul.f32 1.442695, %v3863_v36  ;;  %v3866_v39 = vmul.f32 1.442695, %v3862_v37 }
 0x942   : > { %5548 = vpow2.f32 %v3868_v38  ;;  %v4525_v38 = vld [vmem:[%s6607_s12 + $0x18] sm:$0xff] }
 0x943   : > { %5550 = vpow2.f32 %v3866_v39  ;;  %v4523_v39 = vld [vmem:[%s6607_s12 + $0x8] sm:$0xff] }
 0x947   : > { %v3861_v40 = vpop.xlane.xlu1 %3860  ;;  %v3858_v41 = vpop.xlane.xlu0 %3857 }
 0x948   : > { %v3865_v42 = vsub.f32 %v3847_v29, %v3861_v40  ;;  %v3864_v43 = vsub.f32 %v3771_v28, %v3858_v41  ;;  %v4522_v40 = vld [vmem:[%s6607_s12] sm:$0xff]  ;;  %v4614_v41 = vld [vmem:[%s6609_s14 + $0x38] sm:$0xff] }
 0x94a   : > { %v3872_v44 = vmul.f32 1.442695, %v3865_v42  ;;  %v3870_v45 = vmul.f32 1.442695, %v3864_v43  ;;  %v4613_v42 = vld [vmem:[%s6609_s14 + $0x30] sm:$0xff]  ;;  %v4612_v43 = vld [vmem:[%s6609_s14 + $0x28] sm:$0xff] }
 0x94c   : > { %5552 = vpow2.f32 %v3872_v44  ;;  %v4611_v44 = vld [vmem:[%s6609_s14 + $0x20] sm:$0xff] }
 0x94d   : > { %5554 = vpow2.f32 %v3870_v45  ;;  %v4610_v45 = vld [vmem:[%s6609_s14 + $0x18] sm:$0xff] }
 0x94f   : > { %v5549_v46 = vpop.eup %5548 }
 0x950   : > { %v5551_v48 = vpop.eup %5550  ;;  %v3877_v49 = vsel %vm1669_vm4, %v5549_v46, 0.0 }
 0x951   : > { %3878 = vadd.xlane.f32.xlu1 %v3877_v49  ;;  %v3874_v50 = vsel %vm1669_vm4, %v5551_v48, 0.0 }
 0x952   : > { %3875 = vadd.xlane.f32.xlu0 %v3874_v50 }
 0x959   : > { %v5553_v51 = vpop.eup %5552 }
 0x95a   : > { %v5555_v52 = vpop.eup %5554  ;;  %v3883_v53 = vsel %vm1669_vm4, %v5553_v51, 0.0 }
 0x95b   : > { %3884 = vadd.xlane.f32.xlu1 %v3883_v53  ;;  %v3880_v54 = vsel %vm1669_vm4, %v5555_v52, 0.0 }
 0x95c   : > { %3881 = vadd.xlane.f32.xlu0 %v3880_v54 }
 0x9da   : > { %v3879_v0 = vpop.xlane.xlu1 %3878 }
 0x9db   : > { %5556 = vrcp.f32 %v3879_v0  ;;  %v3876_v55 = vpop.xlane.xlu0 %3875 }
 0x9dc   : > { %5558 = vrcp.f32 %v3876_v55  ;;  %v4877_v55 = vld [vmem:[%s6615_s20] ss:$0 sm:$0xff] }
 0x9e4   : > { %v3885_v56 = vpop.xlane.xlu1 %3884 }
 0x9e5   : > { %5560 = vrcp.f32 %v3885_v56  ;;  %v3882_v57 = vpop.xlane.xlu0 %3881 }
 0x9e6   : > { %5562 = vrcp.f32 %v3882_v57  ;;  %v4878_v57 = vld [vmem:[%s6616_s21] ss:$0 sm:$0xff] }
 0x9e8   : > { %v5557_v58 = vpop.eup %5556 }
 0x9e9   : > { %v5559_v59 = vpop.eup %5558  ;;  %v3891_v60 = vmul.f32 %v5557_v58, %v5549_v46 }
 0x9ea   : > { %v3890_v61 = vmul.f32 %v5559_v59, %v5551_v48 }
 0x9eb   : > { %5421 = vmatmul.mubr.msk.f32.vlgmr.msra.gmra.mxu1 %vm1669_vm4, %v3891_v60  ;;  %v4609_v60 = vld [vmem:[%s6609_s14 + $0x10] sm:$0xff] }
 0x9ec   : > { %5416 = vmatmul.mubr.msk.f32.vlgmr.msra.gmra.mxu0 %vm1669_vm4, %v3890_v61  ;;  %5429 = vmatpush3.msra.mxu1 %v6430_v13  ;;  %v4608_v61 = vld [vmem:[%s6609_s14 + $0x8] sm:$0xff] }
 0x9ed   : > { %5424 = vmatpush3.msra.mxu0 %v6428_v12  ;;  %5425 = vmatprep.mubr.msk.f32.mxu0 %vm5631_vm1, %v5630_v7 }
 0x9ee   : > { %5430 = vmatprep.mubr.msk.f32.mxu1 %vm5631_vm1, %v5630_v7  ;;  %5433 = vmatprep.subr.mxu0 %v5630_v7 }
 0x9ef   : > { %5438 = vmatprep.subr.mxu1 %v5630_v7 }
 0x9f2   : > { %v5561_v62 = vpop.eup %5560 }
 0x9f3   : > { %v5563_v63 = vpop.eup %5562  ;;  %v3893_v1 = vmul.f32 %v5561_v62, %v5553_v51  ;;  %v4607_v62 = vld [vmem:[%s6609_s14] sm:$0xff] }
 0x9f4   : > { %v3892_v2 = vmul.f32 %v5563_v63, %v5555_v52  ;;  %v4879_v63 = vld [vmem:[%s6608_s13] ss:$0 sm:$0xff] }
 0x9f5   : > { %5431 = vmatmul.mubr.msk.f32.vlgmr.msra.gmra.mxu1 %vm1669_vm4, %v3893_v1 }
 0x9f6   : > { %5426 = vmatmul.mubr.msk.f32.vlgmr.msra.gmra.mxu0 %vm1669_vm4, %v3892_v2  ;;  %5440 = vmatprep.mubr.msk.f32.mxu1 %vm5631_vm1, %v5630_v7 }
 0x9f7   : > { %5435 = vmatprep.mubr.msk.f32.mxu0 %vm5631_vm1, %v5630_v7  ;;  %5434 = vmatpush3.msra.mxu0 %v2694_v3 }
 0x9f8   : > { %5439 = vmatpush3.msra.mxu1 %v2695_v4  ;;  %5443 = vmatprep.subr.mxu0 %v5630_v7 }
 0x9f9   : > { %5448 = vmatprep.subr.mxu1 %v5630_v7 }
 0xaab   : > { %v4036_v6 = vpop.f32.mrf.mxu1 }
 0xaac   : > { %v3963_v9 = vpop.f32.mrf.mxu0  ;;  %5441 = vmatmul.mubr.msk.f32.vlgmr.msra.gmra.mxu1 %vm1669_vm4, %v4036_v6 }
 0xaad   : > { %5436 = vmatmul.mubr.msk.f32.vlgmr.msra.gmra.mxu0 %vm1669_vm4, %v3963_v9  ;;  %v5422_v10 = vpop.f32.mrf.mxu1  ;;  %5449 = vmatpush3.msra.mxu1 %v2697_v5 }
 0xaae   : > { %v5417_v11 = vpop.f32.mrf.mxu0  ;;  %5444 = vmatpush3.msra.mxu0 %v2696_v8  ;;  %5445 = vmatprep.mubr.msk.f32.mxu0 %vm5631_vm1, %v5630_v7 }
 0xaaf   : > { %5450 = vmatprep.mubr.msk.f32.mxu1 %vm5631_vm1, %v5630_v7  ;;  %5453 = vmatprep.subr.mxu0 %v5630_v7 }
 0xab0   : > { %5464 = vmatprep.subr.mxu1 %v5630_v7 }
 0xab5   : > { %v4182_v12 = vpop.f32.mrf.mxu1 }
 0xab6   : > { %v4109_v13 = vpop.f32.mrf.mxu0  ;;  %5451 = vmatmul.mubr.msk.f32.vlgmr.msra.gmra.mxu1 %vm1669_vm4, %v4182_v12 }
 0xab7   : > { %5446 = vmatmul.mubr.msk.f32.vlgmr.msra.gmra.mxu0 %vm1669_vm4, %v4109_v13  ;;  %v5432_v14 = vpop.f32.mrf.mxu1  ;;  %5480 = vmatprep.mubr.msk.f32.mxu1 %vm5631_vm1, %v5630_v7 }
 0xab8   : > { %v5427_v15 = vpop.f32.mrf.mxu0  ;;  %5461 = vmatprep.mubr.msk.f32.mxu0 %vm5631_vm1, %v5630_v7  ;;  %5454 = vmatpush3.msra.mxu0 %v4525_v38 }
 0xab9   : > { %5455 = vmatprep.subr.mxu0 %v5630_v7  ;;  %5465 = vmatpush3.msra.mxu1 %v4614_v41 }
 0xaba   : > { %5466 = vmatprep.subr.mxu1 %v5630_v7 }
 0xabb   : > { %5467 = vmatpush3.msra.mxu1 %v4613_v42 }
 0xabc   : > { %5468 = vmatprep.subr.mxu1 %v5630_v7 }
 0xabd   : > { %5469 = vmatpush3.msra.mxu1 %v4612_v43 }
 0xabe   : > { %5470 = vmatprep.subr.mxu1 %v5630_v7 }
 0xabf   : > { %5471 = vmatpush3.msra.mxu1 %v4611_v44 }
 0xac0   : > { %5472 = vmatprep.subr.mxu1 %v5630_v7 }
 0xac1   : > { %5473 = vmatpush3.msra.mxu1 %v4610_v45 }
 0xac2   : > { %5474 = vmatprep.subr.mxu1 %v5630_v7 }
 0xac3   : > { %5475 = vmatpush3.msra.mxu1 %v4609_v60 }
 0xac4   : > { %5476 = vmatprep.subr.mxu1 %v5630_v7 }
 0xac5   : > { %5477 = vmatpush3.msra.mxu1 %v4608_v61 }
 0xac6   : > { %5478 = vmatprep.subr.mxu1 %v5630_v7 }
 0xac7   : > { %5479 = vmatpush3.msra.mxu1 %v4607_v62 }
 0xb6c   : > { %v4328_v16 = vpop.f32.mrf.mxu1 }
 0xb6d   : > { %v4255_v17 = vpop.f32.mrf.mxu0  ;;  %v4479_v21 = vsel %vm736_vm0, %v4328_v16, 0.0 }
 0xb6e   : > { %v5442_v18 = vpop.f32.mrf.mxu1  ;;  %v4478_v20 = vsel %vm736_vm0, %v4255_v17, 0.0 }
 0xb6f   : > { %v5437_v19 = vpop.f32.mrf.mxu0  ;;  %v4480_v23 = vadd.f32 %v4479_v21, %v4478_v20 }
 0xb76   : > { %v4474_v22 = vpop.f32.mrf.mxu1 }
 0xb77   : > { %v4401_v24 = vpop.f32.mrf.mxu0  ;;  %v4483_v29 = vsel %vm736_vm0, %v4474_v22, 0.0 }
 0xb78   : > { %v4481_v25 = vsel %vm736_vm0, %v4401_v24, 0.0  ;;  %v5452_v26 = vpop.f32.mrf.mxu1 }
 0xb79   : > { %v4482_v27 = vadd.f32 %v4481_v25, %v4480_v23  ;;  %v5447_v28 = vpop.f32.mrf.mxu0 }
 0xb7b   : > { %v4484_v30 = vadd.f32 %v4483_v29, %v4482_v27 }
 0xb7d   : > { %v6494_v31 = vadd.f32 %v4484_v30, %v6152_v47  ;;  %v4524_v47 = vld [vmem:[%s6607_s12 + $0x10] sm:$0xff] }
 0xb7e   : > { %5456 = vmatpush3.msra.mxu0 %v4524_v47 }
 0xb7f   : > { %v4488_v32 = vsel %vm736_vm0, %v6494_v31, 0.0  ;;  %5457 = vmatprep.subr.mxu0 %v5630_v7 }
 0xb80   : > { %4489 = vadd.xlane.f32.xlu0 %v4488_v32  ;;  %5458 = vmatpush3.msra.mxu0 %v4523_v39 }
 0xb81   : > { %5459 = vmatprep.subr.mxu0 %v5630_v7  ;;  %v4882_v7 = vld [vmem:[%s6610_s15] ss:$0 sm:$0xff] }
 0xb82   : > { %5460 = vmatpush3.msra.mxu0 %v4522_v40 }
 0xc09   : > { %v4490_v33 = vpop.xlane.xlu0 %4489 }
 0xc0a   : > { %v4491_v34 = vmul.f32 0.03125, %v4490_v33 }
 0xc0c   : > { %v4492_v35 = vsub.f32 %v6494_v31, %v4491_v34 }
 0xc0e   : > { %v4493_v36 = vmul.f32 %v4492_v35, %v4492_v35 }
 0xc10   : > { %v4494_v37 = vsel %vm736_vm0, %v4493_v36, 0.0 }
 0xc11   : > { %4495 = vadd.xlane.f32.xlu1 %v4494_v37 }
 0xc9a   : > { %v4496_v46 = vpop.xlane.xlu1 %4495 }
 0xc9b   : > { %v4497_v48 = vmul.f32 0.032258064, %v4496_v46 }
 0xc9d   : > { %5564 = vrsqrt.f32 %v4497_v48  ;;  %vm4500_vm9 = vcmp.eq.f32.partialorder %v4497_v48, inf  ;;  %v4503_v51 = vand.u32 2147483648, %v4497_v48  ;;  %vm4502_vm10 = vcmp.eq.f32.partialorder %v4497_v48, 0.0 }
 0xcaa   : > { %v5565_v49 = vpop.eup %5564 }
 0xcab   : > { %v4499_v50 = vmul.f32 %v5565_v49, %v4497_v48 }
 0xcad   : > { %v4501_v52 = vsel %vm4500_vm9, %v4497_v48, %v4499_v50 }
 0xcae   : > { %v4504_v53 = vsel %vm4502_vm10, %v4503_v51, %v4501_v52 }
 0xcaf   : > { %v4505_v54 = vadd.f32 1e-06, %v4504_v53 }
 0xcb1   : > { %5566 = vrcp.f32 %v4505_v54 }
 0xcbe   : > { %v5567_v0 = vpop.eup %5566 }
 0xcbf   : > { %v4507_v56 = vmul.f32 %v5567_v0, %v4492_v35 }
 0xcc1   : > { %v4514_v58 = vmul.f32 %v4877_v55, %v4507_v56 }
 0xcc3   : > { %v4521_v59 = vadd.f32 %v4878_v57, %v4514_v58 }
 0xcc5   : > { %5462 = vmatmul.mubr.msk.f32.vlgmr.msra.gmra.mxu0 %vm736_vm0, %v4521_v59 }
 0xd85   : > { %v4602_v1 = vpop.f32.mrf.mxu0 }
 0xd86   : > { %v4603_v2 = vadd.f32 %v4879_v63, %v4602_v1 }
 0xd87   : > { %v5463_v3 = vpop.f32.mrf.mxu0 }
 0xd88   : > { %v4606_v4 = vmax.f32 %v4603_v2, 0.0 }
 0xd8a   : > { %5481 = vmatmul.mubr.msk.f32.vlgmr.msra.gmra.mxu1 %vm4615_vm11, %v4606_v4 }
 0xe4a   : > { %v4685_v5 = vpop.f32.mrf.mxu1 }
 0xe4b   : > { %v4689_v6 = vadd.f32 %v4685_v5, %v6494_v31 }
 0xe4c   : > { %v5482_v8 = vpop.f32.mrf.mxu1 }
 0xe4d   : > { %v4697_v9 = vadd.f32 %v4882_v7, %v4689_v6 }
 0xe4f   : > { %4698 = vst.msk [vmem:[%s713_s26] sm:$0xff] %vm736_vm0, %v4697_v9 }
 0xe50   : > { %5581 = shalt.err (!%p5578_p3)
}
 0xe51   : > { %s5582_s23 = scalar_lea.hbm %s4711_s8, 128  ;;  %s5586_s26 = scalar_lea.hbm %s6617_s22, 256 }
 0xe52   : > { %p5583_p4 = scmp.ne.s32.totalorder %s4711_s8, %s5582_s23  ;;  %p5587_p9 = scmp.lt.s32.totalorder %s4711_s8, %s6617_s22 }
 0xe53   : > { %p5588_p10 = scmp.lt.s32.totalorder %s5586_s26, %s5582_s23 }
 0xe54   : > { %p5584_p7 = pnand %p5583_p4, %p5786_p5 }
 0xe55   : > { %p5589_p11 = por %p5588_p10, %p5587_p9 }
 0xe56   : > { %p5585_p8 = pneg %p5584_p7 }
 0xe58   : > { %p5590_p12 = pnand %p5589_p11, %p5585_p8 }
 0xe5a   : > { %5593 = shalt.err (!%p5590_p12)
}
 0xe5b   : > { %5483 = dma.vmem_to_hbm [thread:$0]  (%p5786_p5), %s4714_s2, 128, %s4711_s8, %s4700_s5  }
 0xe5c PF: > { %p5489_p13 = scmp.ge.s32.totalorder %s5628_s30, 2  ;;  %s4725_s4 = sand.u32 1, %s5616_s3  }
 0xe5d   : > { %s4726_s0 = scalar_lea.sflag [#allocation3], %s4725_s4 }
 0xe5e   : > { %p5486_p0 = pnand %p5489_p13, %p5790_p6 }
 0xe60   : > { %p5487_p1 = pneg %p5486_p0 }
 0xe62   : > { %5611 = dma.done.wait (%p5487_p1), %s4726_s0, 128  }
 0xe63   : > { %5613 = vsyncadd (%p5487_p1), %s4726_s0, 4294967168  ;;  %s6655_s30 = sld [smem:[#allocation6_spill]]  ;;  %s6658_s3 = smov %s5620_s28 }
 0xe64   : > { %s6656_s16 = sld [smem:[#allocation5_spill]] }
 0xe65   : > { %s6657_s29 = sld [smem:[#allocation7_spill]] }
 0xe69   : > { %p32_p2 = scmp.ge.s32.totalorder %s6655_s30, 4  }
 0xe6a   : > { %s6659_s28 = smov %s6656_s16 }
 0xe6b   :  { %34 = sbr.rel (!%p32_p2) target bundleno = 15 (0xf), region = 152 }
 0xe70   :  { %4731 = vsyncpa [#allocation3], 1 }
 0xe71   :  { %4733 = vsyncpa [#allocation3 + $0x1], 1 }

</bundles_post_ra>
